<compile_context>
chip_gen: v7x
topology: tpu7x:2x2x1
jax: 0.10.0
libtpu: 0.0.40
codegen_flags: <defaults>
</compile_context>

<pallas_src>
import functools
import math

import jax
import jax.numpy as jnp
from jax.experimental import pallas as pl
from jax.experimental.pallas import tpu as pltpu


def _round_up(x, m):
    return (x + m - 1) // m * m


def _news_encoder_kernel(x_ref, wq_ref, bq_ref, wk_ref, bk_ref, wv_ref, bv_ref,
                         wa_ref, ba_ref, qv_ref, out_ref, ctx_ref, *, num_heads):
    BB, T, D = x_ref.shape
    dk = D // num_heads
    Dp = out_ref.shape[-1]
    cd = x_ref.dtype                      # compute dtype (bf16 or f32) rides in with x
    scale = 1.0 / math.sqrt(dk)

    # ---- Q/K/V projections on the whole (BB*T, D) slab (f32 accumulation) ----
    x2 = x_ref[...].reshape(BB * T, D)

    def proj(w_ref, b_ref):
        y = jnp.dot(x2, w_ref[...], preferred_element_type=jnp.float32)
        return y + b_ref[...]             # (BB*T, D) f32

    q = proj(wq_ref, bq_ref)
    k = proj(wk_ref, bk_ref)
    v = proj(wv_ref, bv_ref)

    # ---- multi-head self-attention (NRMS style: exp / (sum + 1e-8)) ----
    # Static unroll over heads; each head is a batched (over BB items) contraction.
    for h in range(num_heads):
        sl = slice(h * dk, (h + 1) * dk)
        qh = q[:, sl].reshape(BB, T, dk).astype(cd)
        kh = k[:, sl].reshape(BB, T, dk).astype(cd)
        vh = v[:, sl].reshape(BB, T, dk).astype(cd)
        s = jnp.einsum("btd,bsd->bts", qh, kh,
                       preferred_element_type=jnp.float32) * scale
        s = jnp.exp(s)                    # no max-subtraction: matches the reference
        inv = pl.reciprocal(jnp.sum(s, axis=-1, keepdims=True) + 1e-8, approx=True)
        attn = (s * inv).astype(cd)
        ctx_ref[:, :, sl] = jnp.einsum("bts,bsd->btd", attn, vh,
                                       preferred_element_type=jnp.float32)
    ctx3 = ctx_ref[...]                   # (BB, T, D) f32
    # TODO(synk): F.dropout in training mode not implemented; inference (identity).

    # ---- additive attention ----
    temp = jnp.tanh(
        jnp.dot(ctx3.reshape(BB * T, D).astype(cd), wa_ref[...],
                preferred_element_type=jnp.float32) + ba_ref[...])     # (BB*T, Qd) f32
    temp3 = temp.reshape(BB, T, -1)                                    # (BB, T, Qd)
    logits = jnp.sum(temp3 * qv_ref[...][None], axis=-1, keepdims=True)  # (BB, T, 1)
    logits = logits - jnp.max(logits, axis=1, keepdims=True)           # stable softmax
    e = jnp.exp(logits)
    w = e * pl.reciprocal(jnp.sum(e, axis=1, keepdims=True), approx=True)  # (BB, T, 1)
    out = jnp.sum(w * ctx3, axis=1, keepdims=True).reshape(BB, D)      # (BB, D) f32

    if Dp > D:                            # lane-dense padded output slab
        out = jnp.concatenate([out, jnp.zeros((BB, Dp - D), jnp.float32)], axis=-1)
    out_ref[...] = out


@functools.partial(jax.jit, static_argnames=("num_heads", "block_items", "compute_dtype"))
def news_encoder_forward(title_ids, params, *, num_heads, block_items=128,
                         compute_dtype=jnp.bfloat16):
    B, T = title_ids.shape
    D = params["emb"].shape[1]
    Qd = params["wa"].shape[1]

    # Embedding lookup stays in XLA (padding_idx=0 row of the table is zero,
    # matching nn.Embedding(padding_idx=0)); the kernel only sees activations.
    x = jnp.take(params["emb"], title_ids.astype(jnp.int32), axis=0)   # (B, T, D)
    x = x.astype(compute_dtype)

    # Batch BB items per grid step; pad the batch to a multiple of BB.
    BB = min(block_items, _round_up(B, 8))
    B_pad = _round_up(B, BB)
    if B_pad != B:
        x = jnp.pad(x, ((0, B_pad - B), (0, 0), (0, 0)))

    Dp = _round_up(D, 128)                # lane-dense output width

    wq = params["wq"].astype(compute_dtype); bq = params["bq"].astype(jnp.float32)
    wk = params["wk"].astype(compute_dtype); bk = params["bk"].astype(jnp.float32)
    wv = params["wv"].astype(compute_dtype); bv = params["bv"].astype(jnp.float32)
    wa = params["wa"].astype(compute_dtype); ba = params["ba"].astype(jnp.float32)
    qv = params["qv"].astype(jnp.float32)

    def const_spec(shape):
        return pl.BlockSpec(shape, lambda i, _n=len(shape): (0,) * _n)

    flops_per_item = (6 * T * D * D + 4 * T * T * D + 2 * T * D * Qd
                      + 2 * T * Qd + 2 * T * D)
    trans_per_item = num_heads * T * T + T * Qd + T + num_heads * T + 1
    bytes_accessed = int(
        x.size * x.dtype.itemsize
        + sum(int(a.size * a.dtype.itemsize)
              for a in (wq, bq, wk, bk, wv, bv, wa, ba, qv))
        + B_pad * Dp * 4)

    kernel = functools.partial(_news_encoder_kernel, num_heads=num_heads)

    out = pl.pallas_call(
        kernel,
        out_shape=jax.ShapeDtypeStruct((B_pad, Dp), jnp.float32),
        grid=(B_pad // BB,),
        in_specs=[
            pl.BlockSpec((BB, T, D), lambda i: (i, 0, 0)),   # activation block
            const_spec((D, D)), const_spec((1, D)),          # W_Q, b_Q
            const_spec((D, D)), const_spec((1, D)),          # W_K, b_K
            const_spec((D, D)), const_spec((1, D)),          # W_V, b_V
            const_spec((D, Qd)), const_spec((1, Qd)),        # additive W, b
            const_spec((1, Qd)),                             # additive query vec
        ],
        out_specs=pl.BlockSpec((BB, Dp), lambda i: (i, 0)),
        scratch_shapes=[pltpu.VMEM((BB, T, D), jnp.float32)],   # MHA context slab
        compiler_params=pltpu.CompilerParams(
            dimension_semantics=("parallel",)),
        cost_estimate=pl.CostEstimate(
            flops=int(B_pad * flops_per_item),
            transcendentals=int(B_pad * trans_per_item),
            bytes_accessed=bytes_accessed),
    )(x, wq, bq, wk, bk, wv, bv, wa, ba, qv)
    return out[:B, :D]


def make_params(key, num_words, word_embedding_dim, num_attention_heads, query_vector_dim):
    D, Qd = word_embedding_dim, query_vector_dim
    ks = jax.random.split(key, 10)

    def glorot(k, shape):
        lim = math.sqrt(6.0 / (shape[0] + shape[1]))
        return jax.random.uniform(k, shape, jnp.float32, -lim, lim)

    emb = jax.random.normal(ks[0], (num_words, D), jnp.float32) * 0.1
    emb = emb.at[0].set(0.0)  # padding_idx=0
    return dict(
        emb=emb,
        wq=glorot(ks[1], (D, D)), bq=jax.random.uniform(ks[2], (1, D), jnp.float32, -0.1, 0.1),
        wk=glorot(ks[3], (D, D)), bk=jax.random.uniform(ks[4], (1, D), jnp.float32, -0.1, 0.1),
        wv=glorot(ks[5], (D, D)), bv=jax.random.uniform(ks[6], (1, D), jnp.float32, -0.1, 0.1),
        wa=glorot(ks[7], (D, Qd)),
        ba=jax.random.uniform(ks[8], (1, Qd), jnp.float32, -0.1, 0.1),
        qv=jax.random.uniform(ks[9], (1, Qd), jnp.float32, -0.1, 0.1),
    )


def ref_forward(title_ids, params, num_heads):
    """Pure-JAX reference mirroring the PyTorch module (eval mode), f32."""
    x = jnp.take(params["emb"], title_ids, axis=0)                # (B, T, D)
    B, T, D = x.shape
    dk = D // num_heads
    q = x @ params["wq"] + params["bq"][0]
    k = x @ params["wk"] + params["bk"][0]
    v = x @ params["wv"] + params["bv"][0]
    split = lambda a: a.reshape(B, T, num_heads, dk).transpose(0, 2, 1, 3)
    qh, kh, vh = split(q), split(k), split(v)
    scores = jnp.exp(jnp.einsum("bhtd,bhsd->bhts", qh, kh) / math.sqrt(dk))
    attn = scores / (jnp.sum(scores, axis=-1, keepdims=True) + 1e-8)
    ctx = jnp.einsum("bhts,bhsd->bhtd", attn, vh).transpose(0, 2, 1, 3).reshape(B, T, D)
    temp = jnp.tanh(ctx @ params["wa"] + params["ba"][0])
    w = jax.nn.softmax(temp @ params["qv"][0], axis=1)            # (B, T)
    return jnp.einsum("bt,btd->bd", w, ctx)


if __name__ == "__main__":
    num_words = 64        # vocabulary size
    D = 32                # word_embedding_dim
    H = 4                 # num_attention_heads
    Qd = 16               # query_vector_dim
    T = 8                 # num_words_title

    key = jax.random.PRNGKey(0)
    pkey, ikey1, ikey2 = jax.random.split(key, 3)
    params = make_params(pkey, num_words, D, H, Qd)

    # 1) f32 compute path, single block (tight check).
    B1 = 2
    ids1 = jax.random.randint(ikey1, (B1, T), 0, num_words, dtype=jnp.int32)
    out1 = jax.block_until_ready(
        news_encoder_forward(ids1, params, num_heads=H, compute_dtype=jnp.float32))
    ref1 = ref_forward(ids1, params, H)
    assert out1.shape == (B1, D), out1.shape
    assert jnp.allclose(out1, ref1, atol=5e-3, rtol=5e-3), (out1, ref1)

    # 2) bf16 MXU path, multi-block grid with batch padding (loose check).
    B2 = 20
    ids2 = jax.random.randint(ikey2, (B2, T), 0, num_words, dtype=jnp.int32)
    out2 = jax.block_until_ready(
        news_encoder_forward(ids2, params, num_heads=H, block_items=8,
                             compute_dtype=jnp.bfloat16))
    ref2 = ref_forward(ids2, params, H)
    assert out2.shape == (B2, D), out2.shape
    assert jnp.allclose(out2, ref2, atol=3e-2, rtol=3e-2), (out2, ref2)

    print("KERNEL_OK")
</pallas_src>

<mosaic_0001>
module attributes {stable_mosaic.version = 11 : i64} {
  func.func @_news_encoder_kernel(%arg0: i32, %arg1: memref<8x8x32xf32, #tpu.memory_space<vmem>>, %arg2: memref<32x32xf32, #tpu.memory_space<vmem>>, %arg3: memref<1x32xf32, #tpu.memory_space<vmem>>, %arg4: memref<32x32xf32, #tpu.memory_space<vmem>>, %arg5: memref<1x32xf32, #tpu.memory_space<vmem>>, %arg6: memref<32x32xf32, #tpu.memory_space<vmem>>, %arg7: memref<1x32xf32, #tpu.memory_space<vmem>>, %arg8: memref<32x16xf32, #tpu.memory_space<vmem>>, %arg9: memref<1x16xf32, #tpu.memory_space<vmem>>, %arg10: memref<1x16xf32, #tpu.memory_space<vmem>>, %arg11: memref<8x128xf32, #tpu.memory_space<vmem>>, %arg12: memref<8x8x32xf32, #tpu.memory_space<vmem>>) attributes {dimension_semantics = [#tpu.dimension_semantics<parallel>], iteration_bounds = array<i64: 1>, scalar_prefetch = 0 : i64, scratch_operands = 1 : i64, tpu.core_type = #tpu.core_type<tc>, window_params = [{transform_indices = @transform_0, window_bounds = array<i64: 8, 8, 32>}, {pipeline_mode = #tpu.pipeline_mode<synchronous>, transform_indices = @transform_1, window_bounds = array<i64: 32, 32>}, {pipeline_mode = #tpu.pipeline_mode<synchronous>, transform_indices = @transform_2, window_bounds = array<i64: 1, 32>}, {pipeline_mode = #tpu.pipeline_mode<synchronous>, transform_indices = @transform_3, window_bounds = array<i64: 32, 32>}, {pipeline_mode = #tpu.pipeline_mode<synchronous>, transform_indices = @transform_4, window_bounds = array<i64: 1, 32>}, {pipeline_mode = #tpu.pipeline_mode<synchronous>, transform_indices = @transform_5, window_bounds = array<i64: 32, 32>}, {pipeline_mode = #tpu.pipeline_mode<synchronous>, transform_indices = @transform_6, window_bounds = array<i64: 1, 32>}, {pipeline_mode = #tpu.pipeline_mode<synchronous>, transform_indices = @transform_7, window_bounds = array<i64: 32, 16>}, {pipeline_mode = #tpu.pipeline_mode<synchronous>, transform_indices = @transform_8, window_bounds = array<i64: 1, 16>}, {pipeline_mode = #tpu.pipeline_mode<synchronous>, transform_indices = @transform_9, window_bounds = array<i64: 1, 16>}, {transform_indices = @transform_10, window_bounds = array<i64: 8, 128>}]} {
    %c0 = arith.constant 0 : index
    %c0_0 = arith.constant 0 : index
    %c0_1 = arith.constant 0 : index
    %0 = vector.load %arg1[%c0, %c0_0, %c0_1] : memref<8x8x32xf32, #tpu.memory_space<vmem>>, vector<8x8x32xf32>
    %1 = vector.shape_cast %0 : vector<8x8x32xf32> to vector<64x32xf32>
    %c0_2 = arith.constant 0 : index
    %c0_3 = arith.constant 0 : index
    %2 = vector.load %arg2[%c0_2, %c0_3] : memref<32x32xf32, #tpu.memory_space<vmem>>, vector<32x32xf32>
    %cst = arith.constant dense<0.000000e+00> : vector<64x32xf32>
    %3 = tpu.matmul %1, %2, %cst {dimension_numbers = #tpu.dot_dimension_numbers<[1], [0], [0], [1], [0, 0, 1, 1], [], []>} : vector<64x32xf32>, vector<32x32xf32>, vector<64x32xf32> -> vector<64x32xf32>
    %c0_4 = arith.constant 0 : index
    %c0_5 = arith.constant 0 : index
    %4 = vector.load %arg3[%c0_4, %c0_5] : memref<1x32xf32, #tpu.memory_space<vmem>>, vector<1x32xf32>
    %5 = vector.broadcast %4 : vector<1x32xf32> to vector<64x32xf32>
    %6 = arith.addf %3, %5 : vector<64x32xf32>
    %c0_6 = arith.constant 0 : index
    %c0_7 = arith.constant 0 : index
    %7 = vector.load %arg4[%c0_6, %c0_7] : memref<32x32xf32, #tpu.memory_space<vmem>>, vector<32x32xf32>
    %cst_8 = arith.constant dense<0.000000e+00> : vector<64x32xf32>
    %8 = tpu.matmul %1, %7, %cst_8 {dimension_numbers = #tpu.dot_dimension_numbers<[1], [0], [0], [1], [0, 0, 1, 1], [], []>} : vector<64x32xf32>, vector<32x32xf32>, vector<64x32xf32> -> vector<64x32xf32>
    %c0_9 = arith.constant 0 : index
    %c0_10 = arith.constant 0 : index
    %9 = vector.load %arg5[%c0_9, %c0_10] : memref<1x32xf32, #tpu.memory_space<vmem>>, vector<1x32xf32>
    %10 = vector.broadcast %9 : vector<1x32xf32> to vector<64x32xf32>
    %11 = arith.addf %8, %10 : vector<64x32xf32>
    %c0_11 = arith.constant 0 : index
    %c0_12 = arith.constant 0 : index
    %12 = vector.load %arg6[%c0_11, %c0_12] : memref<32x32xf32, #tpu.memory_space<vmem>>, vector<32x32xf32>
    %cst_13 = arith.constant dense<0.000000e+00> : vector<64x32xf32>
    %13 = tpu.matmul %1, %12, %cst_13 {dimension_numbers = #tpu.dot_dimension_numbers<[1], [0], [0], [1], [0, 0, 1, 1], [], []>} : vector<64x32xf32>, vector<32x32xf32>, vector<64x32xf32> -> vector<64x32xf32>
    %c0_14 = arith.constant 0 : index
    %c0_15 = arith.constant 0 : index
    %14 = vector.load %arg7[%c0_14, %c0_15] : memref<1x32xf32, #tpu.memory_space<vmem>>, vector<1x32xf32>
    %15 = vector.broadcast %14 : vector<1x32xf32> to vector<64x32xf32>
    %16 = arith.addf %13, %15 : vector<64x32xf32>
    %17 = vector.extract_strided_slice %6 {offsets = [0, 0], sizes = [64, 8], strides = [1, 1]} : vector<64x32xf32> to vector<64x8xf32>
    %18 = vector.shape_cast %17 : vector<64x8xf32> to vector<8x8x8xf32>
    %19 = vector.extract_strided_slice %11 {offsets = [0, 0], sizes = [64, 8], strides = [1, 1]} : vector<64x32xf32> to vector<64x8xf32>
    %20 = vector.shape_cast %19 : vector<64x8xf32> to vector<8x8x8xf32>
    %21 = vector.extract_strided_slice %16 {offsets = [0, 0], sizes = [64, 8], strides = [1, 1]} : vector<64x32xf32> to vector<64x8xf32>
    %22 = vector.shape_cast %21 : vector<64x8xf32> to vector<8x8x8xf32>
    "tpu.trace_start"() <{level = 10 : i32, message = "btd,bsd->bts"}> : () -> ()
    %cst_16 = arith.constant dense<0.000000e+00> : vector<8x8x8xf32>
    %23 = tpu.matmul %18, %20, %cst_16 {dimension_numbers = #tpu.dot_dimension_numbers<[2], [2], [1], [1], [0, 0, 0, 1, 1, 1], [0], [0]>} : vector<8x8x8xf32>, vector<8x8x8xf32>, vector<8x8x8xf32> -> vector<8x8x8xf32>
    "tpu.trace_stop"() : () -> ()
    %cst_17 = arith.constant 0.353553385 : f32
    %24 = vector.broadcast %cst_17 : f32 to vector<8x8x8xf32>
    %25 = arith.mulf %23, %24 : vector<8x8x8xf32>
    %26 = math.exp %25 : vector<8x8x8xf32>
    %cst_18 = arith.constant dense<0.000000e+00> : vector<8x8xf32>
    %27 = vector.multi_reduction <add>, %26, %cst_18 [2] : vector<8x8x8xf32> to vector<8x8xf32>
    %28 = vector.shape_cast %27 : vector<8x8xf32> to vector<8x8x1xf32>
    %cst_19 = arith.constant 9.99999993E-9 : f32
    %29 = vector.broadcast %cst_19 : f32 to vector<8x8x1xf32>
    %30 = arith.addf %28, %29 : vector<8x8x1xf32>
    %31 = tpu.reciprocal %30 {approx = true} : vector<8x8x1xf32> -> vector<8x8x1xf32>
    %32 = vector.broadcast %31 : vector<8x8x1xf32> to vector<8x8x8xf32>
    %33 = arith.mulf %26, %32 : vector<8x8x8xf32>
    "tpu.trace_start"() <{level = 10 : i32, message = "bts,bsd->btd"}> : () -> ()
    %cst_20 = arith.constant dense<0.000000e+00> : vector<8x8x8xf32>
    %34 = tpu.matmul %33, %22, %cst_20 {dimension_numbers = #tpu.dot_dimension_numbers<[2], [1], [1], [2], [0, 0, 0, 1, 1, 2], [0], [0]>} : vector<8x8x8xf32>, vector<8x8x8xf32>, vector<8x8x8xf32> -> vector<8x8x8xf32>
    "tpu.trace_stop"() : () -> ()
    %c0_21 = arith.constant 0 : index
    %c0_22 = arith.constant 0 : index
    %c0_23 = arith.constant 0 : index
    %35 = vector.load %arg12[%c0_21, %c0_22, %c0_23] : memref<8x8x32xf32, #tpu.memory_space<vmem>>, vector<8x8x8xf32>
    tpu.vector_store %arg12[%c0_21, %c0_22, %c0_23], %34 {strides = array<i32>} : memref<8x8x32xf32, #tpu.memory_space<vmem>>, vector<8x8x8xf32>,
    %36 = vector.extract_strided_slice %6 {offsets = [0, 8], sizes = [64, 8], strides = [1, 1]} : vector<64x32xf32> to vector<64x8xf32>
    %37 = vector.shape_cast %36 : vector<64x8xf32> to vector<8x8x8xf32>
    %38 = vector.extract_strided_slice %11 {offsets = [0, 8], sizes = [64, 8], strides = [1, 1]} : vector<64x32xf32> to vector<64x8xf32>
    %39 = vector.shape_cast %38 : vector<64x8xf32> to vector<8x8x8xf32>
    %40 = vector.extract_strided_slice %16 {offsets = [0, 8], sizes = [64, 8], strides = [1, 1]} : vector<64x32xf32> to vector<64x8xf32>
    %41 = vector.shape_cast %40 : vector<64x8xf32> to vector<8x8x8xf32>
    "tpu.trace_start"() <{level = 10 : i32, message = "btd,bsd->bts"}> : () -> ()
    %cst_24 = arith.constant dense<0.000000e+00> : vector<8x8x8xf32>
    %42 = tpu.matmul %37, %39, %cst_24 {dimension_numbers = #tpu.dot_dimension_numbers<[2], [2], [1], [1], [0, 0, 0, 1, 1, 1], [0], [0]>} : vector<8x8x8xf32>, vector<8x8x8xf32>, vector<8x8x8xf32> -> vector<8x8x8xf32>
    "tpu.trace_stop"() : () -> ()
    %cst_25 = arith.constant 0.353553385 : f32
    %43 = vector.broadcast %cst_25 : f32 to vector<8x8x8xf32>
    %44 = arith.mulf %42, %43 : vector<8x8x8xf32>
    %45 = math.exp %44 : vector<8x8x8xf32>
    %cst_26 = arith.constant dense<0.000000e+00> : vector<8x8xf32>
    %46 = vector.multi_reduction <add>, %45, %cst_26 [2] : vector<8x8x8xf32> to vector<8x8xf32>
    %47 = vector.shape_cast %46 : vector<8x8xf32> to vector<8x8x1xf32>
    %cst_27 = arith.constant 9.99999993E-9 : f32
    %48 = vector.broadcast %cst_27 : f32 to vector<8x8x1xf32>
    %49 = arith.addf %47, %48 : vector<8x8x1xf32>
    %50 = tpu.reciprocal %49 {approx = true} : vector<8x8x1xf32> -> vector<8x8x1xf32>
    %51 = vector.broadcast %50 : vector<8x8x1xf32> to vector<8x8x8xf32>
    %52 = arith.mulf %45, %51 : vector<8x8x8xf32>
    "tpu.trace_start"() <{level = 10 : i32, message = "bts,bsd->btd"}> : () -> ()
    %cst_28 = arith.constant dense<0.000000e+00> : vector<8x8x8xf32>
    %53 = tpu.matmul %52, %41, %cst_28 {dimension_numbers = #tpu.dot_dimension_numbers<[2], [1], [1], [2], [0, 0, 0, 1, 1, 2], [0], [0]>} : vector<8x8x8xf32>, vector<8x8x8xf32>, vector<8x8x8xf32> -> vector<8x8x8xf32>
    "tpu.trace_stop"() : () -> ()
    %c0_29 = arith.constant 0 : index
    %c0_30 = arith.constant 0 : index
    %c8 = arith.constant 8 : index
    %54 = vector.load %arg12[%c0_29, %c0_30, %c8] : memref<8x8x32xf32, #tpu.memory_space<vmem>>, vector<8x8x8xf32>
    tpu.vector_store %arg12[%c0_29, %c0_30, %c8], %53 {strides = array<i32>} : memref<8x8x32xf32, #tpu.memory_space<vmem>>, vector<8x8x8xf32>,
    %55 = vector.extract_strided_slice %6 {offsets = [0, 16], sizes = [64, 8], strides = [1, 1]} : vector<64x32xf32> to vector<64x8xf32>
    %56 = vector.shape_cast %55 : vector<64x8xf32> to vector<8x8x8xf32>
    %57 = vector.extract_strided_slice %11 {offsets = [0, 16], sizes = [64, 8], strides = [1, 1]} : vector<64x32xf32> to vector<64x8xf32>
    %58 = vector.shape_cast %57 : vector<64x8xf32> to vector<8x8x8xf32>
    %59 = vector.extract_strided_slice %16 {offsets = [0, 16], sizes = [64, 8], strides = [1, 1]} : vector<64x32xf32> to vector<64x8xf32>
    %60 = vector.shape_cast %59 : vector<64x8xf32> to vector<8x8x8xf32>
    "tpu.trace_start"() <{level = 10 : i32, message = "btd,bsd->bts"}> : () -> ()
    %cst_31 = arith.constant dense<0.000000e+00> : vector<8x8x8xf32>
    %61 = tpu.matmul %56, %58, %cst_31 {dimension_numbers = #tpu.dot_dimension_numbers<[2], [2], [1], [1], [0, 0, 0, 1, 1, 1], [0], [0]>} : vector<8x8x8xf32>, vector<8x8x8xf32>, vector<8x8x8xf32> -> vector<8x8x8xf32>
    "tpu.trace_stop"() : () -> ()
    %cst_32 = arith.constant 0.353553385 : f32
    %62 = vector.broadcast %cst_32 : f32 to vector<8x8x8xf32>
    %63 = arith.mulf %61, %62 : vector<8x8x8xf32>
    %64 = math.exp %63 : vector<8x8x8xf32>
    %cst_33 = arith.constant dense<0.000000e+00> : vector<8x8xf32>
    %65 = vector.multi_reduction <add>, %64, %cst_33 [2] : vector<8x8x8xf32> to vector<8x8xf32>
    %66 = vector.shape_cast %65 : vector<8x8xf32> to vector<8x8x1xf32>
    %cst_34 = arith.constant 9.99999993E-9 : f32
    %67 = vector.broadcast %cst_34 : f32 to vector<8x8x1xf32>
    %68 = arith.addf %66, %67 : vector<8x8x1xf32>
    %69 = tpu.reciprocal %68 {approx = true} : vector<8x8x1xf32> -> vector<8x8x1xf32>
    %70 = vector.broadcast %69 : vector<8x8x1xf32> to vector<8x8x8xf32>
    %71 = arith.mulf %64, %70 : vector<8x8x8xf32>
    "tpu.trace_start"() <{level = 10 : i32, message = "bts,bsd->btd"}> : () -> ()
    %cst_35 = arith.constant dense<0.000000e+00> : vector<8x8x8xf32>
    %72 = tpu.matmul %71, %60, %cst_35 {dimension_numbers = #tpu.dot_dimension_numbers<[2], [1], [1], [2], [0, 0, 0, 1, 1, 2], [0], [0]>} : vector<8x8x8xf32>, vector<8x8x8xf32>, vector<8x8x8xf32> -> vector<8x8x8xf32>
    "tpu.trace_stop"() : () -> ()
    %c0_36 = arith.constant 0 : index
    %c0_37 = arith.constant 0 : index
    %c16 = arith.constant 16 : index
    %73 = vector.load %arg12[%c0_36, %c0_37, %c16] : memref<8x8x32xf32, #tpu.memory_space<vmem>>, vector<8x8x8xf32>
    tpu.vector_store %arg12[%c0_36, %c0_37, %c16], %72 {strides = array<i32>} : memref<8x8x32xf32, #tpu.memory_space<vmem>>, vector<8x8x8xf32>,
    %74 = vector.extract_strided_slice %6 {offsets = [0, 24], sizes = [64, 8], strides = [1, 1]} : vector<64x32xf32> to vector<64x8xf32>
    %75 = vector.shape_cast %74 : vector<64x8xf32> to vector<8x8x8xf32>
    %76 = vector.extract_strided_slice %11 {offsets = [0, 24], sizes = [64, 8], strides = [1, 1]} : vector<64x32xf32> to vector<64x8xf32>
    %77 = vector.shape_cast %76 : vector<64x8xf32> to vector<8x8x8xf32>
    %78 = vector.extract_strided_slice %16 {offsets = [0, 24], sizes = [64, 8], strides = [1, 1]} : vector<64x32xf32> to vector<64x8xf32>
    %79 = vector.shape_cast %78 : vector<64x8xf32> to vector<8x8x8xf32>
    "tpu.trace_start"() <{level = 10 : i32, message = "btd,bsd->bts"}> : () -> ()
    %cst_38 = arith.constant dense<0.000000e+00> : vector<8x8x8xf32>
    %80 = tpu.matmul %75, %77, %cst_38 {dimension_numbers = #tpu.dot_dimension_numbers<[2], [2], [1], [1], [0, 0, 0, 1, 1, 1], [0], [0]>} : vector<8x8x8xf32>, vector<8x8x8xf32>, vector<8x8x8xf32> -> vector<8x8x8xf32>
    "tpu.trace_stop"() : () -> ()
    %cst_39 = arith.constant 0.353553385 : f32
    %81 = vector.broadcast %cst_39 : f32 to vector<8x8x8xf32>
    %82 = arith.mulf %80, %81 : vector<8x8x8xf32>
    %83 = math.exp %82 : vector<8x8x8xf32>
    %cst_40 = arith.constant dense<0.000000e+00> : vector<8x8xf32>
    %84 = vector.multi_reduction <add>, %83, %cst_40 [2] : vector<8x8x8xf32> to vector<8x8xf32>
    %85 = vector.shape_cast %84 : vector<8x8xf32> to vector<8x8x1xf32>
    %cst_41 = arith.constant 9.99999993E-9 : f32
    %86 = vector.broadcast %cst_41 : f32 to vector<8x8x1xf32>
    %87 = arith.addf %85, %86 : vector<8x8x1xf32>
    %88 = tpu.reciprocal %87 {approx = true} : vector<8x8x1xf32> -> vector<8x8x1xf32>
    %89 = vector.broadcast %88 : vector<8x8x1xf32> to vector<8x8x8xf32>
    %90 = arith.mulf %83, %89 : vector<8x8x8xf32>
    "tpu.trace_start"() <{level = 10 : i32, message = "bts,bsd->btd"}> : () -> ()
    %cst_42 = arith.constant dense<0.000000e+00> : vector<8x8x8xf32>
    %91 = tpu.matmul %90, %79, %cst_42 {dimension_numbers = #tpu.dot_dimension_numbers<[2], [1], [1], [2], [0, 0, 0, 1, 1, 2], [0], [0]>} : vector<8x8x8xf32>, vector<8x8x8xf32>, vector<8x8x8xf32> -> vector<8x8x8xf32>
    "tpu.trace_stop"() : () -> ()
    %c0_43 = arith.constant 0 : index
    %c0_44 = arith.constant 0 : index
    %c24 = arith.constant 24 : index
    %92 = vector.load %arg12[%c0_43, %c0_44, %c24] : memref<8x8x32xf32, #tpu.memory_space<vmem>>, vector<8x8x8xf32>
    tpu.vector_store %arg12[%c0_43, %c0_44, %c24], %91 {strides = array<i32>} : memref<8x8x32xf32, #tpu.memory_space<vmem>>, vector<8x8x8xf32>,
    %c0_45 = arith.constant 0 : index
    %c0_46 = arith.constant 0 : index
    %c0_47 = arith.constant 0 : index
    %93 = vector.load %arg12[%c0_45, %c0_46, %c0_47] : memref<8x8x32xf32, #tpu.memory_space<vmem>>, vector<8x8x32xf32>
    %94 = vector.shape_cast %93 : vector<8x8x32xf32> to vector<64x32xf32>
    %c0_48 = arith.constant 0 : index
    %c0_49 = arith.constant 0 : index
    %95 = vector.load %arg8[%c0_48, %c0_49] : memref<32x16xf32, #tpu.memory_space<vmem>>, vector<32x16xf32>
    %cst_50 = arith.constant dense<0.000000e+00> : vector<64x16xf32>
    %96 = tpu.matmul %94, %95, %cst_50 {dimension_numbers = #tpu.dot_dimension_numbers<[1], [0], [0], [1], [0, 0, 1, 1], [], []>} : vector<64x32xf32>, vector<32x16xf32>, vector<64x16xf32> -> vector<64x16xf32>
    %c0_51 = arith.constant 0 : index
    %c0_52 = arith.constant 0 : index
    %97 = vector.load %arg9[%c0_51, %c0_52] : memref<1x16xf32, #tpu.memory_space<vmem>>, vector<1x16xf32>
    %98 = vector.broadcast %97 : vector<1x16xf32> to vector<64x16xf32>
    %99 = arith.addf %96, %98 : vector<64x16xf32>
    %100 = math.tanh %99 : vector<64x16xf32>
    %101 = vector.shape_cast %100 : vector<64x16xf32> to vector<8x8x16xf32>
    %c0_53 = arith.constant 0 : index
    %c0_54 = arith.constant 0 : index
    %102 = vector.load %arg10[%c0_53, %c0_54] : memref<1x16xf32, #tpu.memory_space<vmem>>, vector<1x16xf32>
    %103 = vector.shape_cast %102 : vector<1x16xf32> to vector<1x1x16xf32>
    %104 = vector.broadcast %103 : vector<1x1x16xf32> to vector<8x8x16xf32>
    %105 = arith.mulf %101, %104 : vector<8x8x16xf32>
    %cst_55 = arith.constant dense<0.000000e+00> : vector<8x8xf32>
    %106 = vector.multi_reduction <add>, %105, %cst_55 [2] : vector<8x8x16xf32> to vector<8x8xf32>
    %107 = vector.shape_cast %106 : vector<8x8xf32> to vector<8x8x1xf32>
    %cst_56 = arith.constant dense<0xFF800000> : vector<8x1xf32>
    %108 = vector.multi_reduction <maximumf>, %107, %cst_56 [1] : vector<8x8x1xf32> to vector<8x1xf32>
    %109 = vector.shape_cast %108 : vector<8x1xf32> to vector<8x1x1xf32>
    %110 = vector.broadcast %109 : vector<8x1x1xf32> to vector<8x8x1xf32>
    %111 = arith.subf %107, %110 : vector<8x8x1xf32>
    %112 = math.exp %111 : vector<8x8x1xf32>
    %cst_57 = arith.constant dense<0.000000e+00> : vector<8x1xf32>
    %113 = vector.multi_reduction <add>, %112, %cst_57 [1] : vector<8x8x1xf32> to vector<8x1xf32>
    %114 = vector.shape_cast %113 : vector<8x1xf32> to vector<8x1x1xf32>
    %115 = tpu.reciprocal %114 {approx = true} : vector<8x1x1xf32> -> vector<8x1x1xf32>
    %116 = vector.broadcast %115 : vector<8x1x1xf32> to vector<8x8x1xf32>
    %117 = arith.mulf %112, %116 : vector<8x8x1xf32>
    %118 = vector.broadcast %117 : vector<8x8x1xf32> to vector<8x8x32xf32>
    %119 = arith.mulf %118, %93 : vector<8x8x32xf32>
    %cst_58 = arith.constant dense<0.000000e+00> : vector<8x32xf32>
    %120 = vector.multi_reduction <add>, %119, %cst_58 [1] : vector<8x8x32xf32> to vector<8x32xf32>
    %121 = vector.shape_cast %120 : vector<8x32xf32> to vector<8x1x32xf32>
    %122 = vector.shape_cast %121 : vector<8x1x32xf32> to vector<8x32xf32>
    %cst_59 = arith.constant 0.000000e+00 : f32
    %123 = vector.broadcast %cst_59 : f32 to vector<8x96xf32>
    %124 = tpu.concatenate %122, %123 in 1 : vector<8x32xf32>, vector<8x96xf32> -> vector<8x128xf32>
    %c0_60 = arith.constant 0 : index
    %c0_61 = arith.constant 0 : index
    %125 = vector.load %arg11[%c0_60, %c0_61] : memref<8x128xf32, #tpu.memory_space<vmem>>, vector<8x128xf32>
    tpu.vector_store %arg11[%c0_60, %c0_61], %124 {strides = array<i32>} : memref<8x128xf32, #tpu.memory_space<vmem>>, vector<8x128xf32>,
    return
  }
  func.func @transform_0(%arg0: i32) -> (i32, i32, i32) {
    %c0_i32 = arith.constant 0 : i32
    %c0_i32_0 = arith.constant 0 : i32
    %c0_i32_1 = arith.constant 0 : i32
    return %arg0, %c0_i32, %c0_i32_0 : i32, i32, i32
  }
  func.func @transform_1(%arg0: i32) -> (i32, i32) {
    %c0_i32 = arith.constant 0 : i32
    %c0_i32_0 = arith.constant 0 : i32
    %c0_i32_1 = arith.constant 0 : i32
    return %c0_i32, %c0_i32_0 : i32, i32
  }
  func.func @transform_2(%arg0: i32) -> (i32, i32) {
    %c0_i32 = arith.constant 0 : i32
    %c0_i32_0 = arith.constant 0 : i32
    %c0_i32_1 = arith.constant 0 : i32
    return %c0_i32, %c0_i32_0 : i32, i32
  }
  func.func @transform_3(%arg0: i32) -> (i32, i32) {
    %c0_i32 = arith.constant 0 : i32
    %c0_i32_0 = arith.constant 0 : i32
    %c0_i32_1 = arith.constant 0 : i32
    return %c0_i32, %c0_i32_0 : i32, i32
  }
  func.func @transform_4(%arg0: i32) -> (i32, i32) {
    %c0_i32 = arith.constant 0 : i32
    %c0_i32_0 = arith.constant 0 : i32
    %c0_i32_1 = arith.constant 0 : i32
    return %c0_i32, %c0_i32_0 : i32, i32
  }
  func.func @transform_5(%arg0: i32) -> (i32, i32) {
    %c0_i32 = arith.constant 0 : i32
    %c0_i32_0 = arith.constant 0 : i32
    %c0_i32_1 = arith.constant 0 : i32
    return %c0_i32, %c0_i32_0 : i32, i32
  }
  func.func @transform_6(%arg0: i32) -> (i32, i32) {
    %c0_i32 = arith.constant 0 : i32
    %c0_i32_0 = arith.constant 0 : i32
    %c0_i32_1 = arith.constant 0 : i32
    return %c0_i32, %c0_i32_0 : i32, i32
  }
  func.func @transform_7(%arg0: i32) -> (i32, i32) {
    %c0_i32 = arith.constant 0 : i32
    %c0_i32_0 = arith.constant 0 : i32
    %c0_i32_1 = arith.constant 0 : i32
    return %c0_i32, %c0_i32_0 : i32, i32
  }
  func.func @transform_8(%arg0: i32) -> (i32, i32) {
    %c0_i32 = arith.constant 0 : i32
    %c0_i32_0 = arith.constant 0 : i32
    %c0_i32_1 = arith.constant 0 : i32
    return %c0_i32, %c0_i32_0 : i32, i32
  }
  func.func @transform_9(%arg0: i32) -> (i32, i32) {
    %c0_i32 = arith.constant 0 : i32
    %c0_i32_0 = arith.constant 0 : i32
    %c0_i32_1 = arith.constant 0 : i32
    return %c0_i32, %c0_i32_0 : i32, i32
  }
  func.func @transform_10(%arg0: i32) -> (i32, i32) {
    %c0_i32 = arith.constant 0 : i32
    %c0_i32_0 = arith.constant 0 : i32
    return %arg0, %c0_i32 : i32, i32
  }
}

</mosaic_0001>

<bundles_post_ra>
// kernel: news_encoder_forward.1
= control target key start
LH: loop header
LB: loop body
LE: loop exit
PB: predicated region body
PF: predicated region fallthrough
CT: control target
= control target key end

     0   :  { %vm54_vm0 = vcmask 261120   ;;  %v7086_v26 = vmov 0.0   ;;  %vm7087_vm1 = vmmov 0   ;;  %s7088_s30 = smov 120   ;;  %vm416_vm2 = vcmask 64512   ;;  %s7090_s13 = smov 104   ;;  %s8170_s1 = inlined_call_operand.vmem [shape: f32[32,32], index: 1, kind: input, shape index: {}]   ;;  %s8171_s0 = inlined_call_operand.vmem [shape: f32[8,8,32], index: 0, kind: input, shape index: {}]   ;;  %s8172_s3 = inlined_call_operand.vmem [shape: f32[32,32], index: 3, kind: input, shape index: {}]   ;;  %s8173_s5 = inlined_call_operand.vmem [shape: f32[32,32], index: 5, kind: input, shape index: {}]   ;;  %s8174_s2 = inlined_call_operand.vmem [shape: f32[1,32], index: 2, kind: input, shape index: {}]   ;;  %s8175_s4 = inlined_call_operand.vmem [shape: f32[1,32], index: 4, kind: input, shape index: {}]   ;;  %s8176_s6 = inlined_call_operand.vmem [shape: f32[1,32], index: 6, kind: input, shape index: {}]   ;;  %s8177_s7 = inlined_call_operand.vmem [shape: f32[32,16], index: 7, kind: input, shape index: {}]   ;;  %s8178_s8 = inlined_call_operand.vmem [shape: f32[1,16], index: 8, kind: input, shape index: {}]   ;;  %s8179_s9 = inlined_call_operand.vmem [shape: f32[1,16], index: 9, kind: input, shape index: {}]   ;;  %s8180_s10 = inlined_call_operand.vmem [shape: f32[8,128], index: 10, kind: output, shape index: {}]  }
   0x1   :  { %v43_v0 = vld [vmem:[%s8170_s1] sm:$0xff]  ;;  %v44_v1 = vld [vmem:[%s8170_s1 + $0x8] sm:$0xff]  ;;  %v45_v2 = vld [vmem:[%s8170_s1 + $0x10] sm:$0xff]  ;;  %s7091_s14 = smov 8   ;;  %s7092_s15 = smov 16   ;;  %vm3033_vm3 = vcmask 130112  }
   0x2   :  { %v6866_v3 = vpack.c.bf16 %v44_v1, %v43_v0  ;;  %v46_v4 = vld [vmem:[%s8170_s1 + $0x18] sm:$0xff]  ;;  %v35_v5 = vld [vmem:[%s8171_s0] sm:$0xff]  ;;  %v185_v9 = vld [vmem:[%s8172_s3 + $0x8] sm:$0xff]  ;;  %vm4378_vm4 = vcmask 195712   ;;  %s7093_s16 = smov 24   ;;  %vm5723_vm5 = vcmask 261312  }
   0x3   :  { %v39_v6 = vld [vmem:[%s8171_s0 + $0x20] sm:$0xff]  ;;  %v6870_v7 = vpack.c.bf16 %v46_v4, %v45_v2  ;;  %6474 = vmatprep.mubr.msk.f32.mxu0 %vm54_vm0, %v35_v5  ;;  %v301_v12 = vld [vmem:[%s8173_s5 + $0x8] sm:$0xff]  ;;  %v186_v13 = vld [vmem:[%s8172_s3 + $0x10] sm:$0xff]  ;;  %vm5903_vm6 = vcmask 130048   ;;  %vm6136_vm7 = vcmask 1041409   ;;  %vm6138_vm8 = vcmask 1042434  }
   0x4   :  { %6480 = vmatprep.mubr.msk.f32.mxu1 %vm54_vm0, %v39_v6  ;;  %v184_v8 = vld [vmem:[%s8172_s3] sm:$0xff]  ;;  %6867 = vmatprep.subr.bf16.mxu0 %v6866_v3  ;;  %v187_v14 = vld [vmem:[%s8172_s3 + $0x18] sm:$0xff]  ;;  %v36_v16 = vld [vmem:[%s8171_s0 + $0x8] sm:$0xff]  ;;  %vm6140_vm9 = vcmask 1043459   ;;  %vm6142_vm10 = vcmask 1044484   ;;  %vm6144_vm11 = vcmask 1045509  }
   0x5   :  { %6898 = vmatprep.subr.bf16.mxu1 %v6866_v3  ;;  %6869 = vmatpush3.bf16.msra.mxu0 %v6866_v3  ;;  %v6874_v10 = vpack.c.bf16 %v185_v9, %v184_v8  ;;  %v300_v11 = vld [vmem:[%s8173_s5] sm:$0xff]  ;;  %v40_v17 = vld [vmem:[%s8171_s0 + $0x28] sm:$0xff]  ;;  %v41_v18 = vld [vmem:[%s8171_s0 + $0x30] sm:$0xff]  ;;  %v6878_v19 = vpack.c.bf16 %v187_v14, %v186_v13  ;;  %vm6146_vm12 = vcmask 1046534   ;;  %vm6148_vm13 = vcmask 1047559  }
   0x6   :  { %6900 = vmatpush3.bf16.msra.mxu1 %v6866_v3  ;;  %6871 = vmatprep.subr.bf16.mxu0 %v6870_v7  ;;  %v6882_v15 = vpack.c.bf16 %v301_v12, %v300_v11  ;;  %v42_v20 = vld [vmem:[%s8171_s0 + $0x38] sm:$0xff]  ;;  %v37_v21 = vld [vmem:[%s8171_s0 + $0x10] sm:$0xff]  ;;  %v7242_v27 = vld [vmem:[%s8174_s2] ss:$0 sm:$0xff] }
   0x7   :  { %6899 = vmatprep.subr.bf16.mxu1 %v6870_v7  ;;  %v38_v22 = vld [vmem:[%s8171_s0 + $0x18] sm:$0xff]  ;;  %v302_v23 = vld [vmem:[%s8173_s5 + $0x10] sm:$0xff]  ;;  %v6166_v38 = vld [vmem:[%s8175_s4] ss:$0 sm:$0xff] }
   0x8   :  { %v303_v24 = vld [vmem:[%s8173_s5 + $0x18] sm:$0xff]  ;;  %v6175_v62 = vld [vmem:[%s8176_s6] ss:$0 sm:$0xff]  ;;  %s7089_s6 = smov 112  }
   0x9   :  { %6873 = vmatpush3.bf16.msra.mxu0 %v6870_v7  ;;  %v6886_v25 = vpack.c.bf16 %v303_v24, %v302_v23 }
   0xa   :  { %6901 = vmatpush3.bf16.msra.mxu1 %v6870_v7  ;;  %6883 = vmatprep.subr.bf16.mxu0 %v6882_v15 }
   0xb   :  { %6875 = vmatprep.subr.bf16.mxu1 %v6874_v10 }
   0xc   :  { %6475 = vmatmul.mubr.msk.f32.vlgmr.msra.gmra.mrb[0].mxu0 %vm54_vm0, %v36_v16 }
   0xd   :  { %6481 = vmatmul.mubr.msk.f32.vlgmr.msra.gmra.mrb[0].mxu1 %vm54_vm0, %v40_v17  ;;  %6477 = vmatprep.mubr.msk.f32.mxu0 %vm54_vm0, %v37_v21 }
   0xe   :  { %6877 = vmatpush3.bf16.msra.mxu1 %v6874_v10  ;;  %6483 = vmatprep.mubr.msk.f32.mxu1 %vm54_vm0, %v41_v18 }
   0xf   :  { %6879 = vmatprep.subr.bf16.mxu1 %v6878_v19  ;;  %6885 = vmatpush3.bf16.msra.mxu0 %v6882_v15 }
  0x10   :  { %6478 = vmatmul.mubr.msk.f32.gmra.mrb[2].mxu0 %vm54_vm0, %v38_v22  ;;  %6887 = vmatprep.subr.bf16.mxu0 %v6886_v25 }
  0x11   :  { %6484 = vmatmul.mubr.msk.f32.gmra.mrb[2].mxu1 %vm54_vm0, %v42_v20  ;;  %6514 = vmatprep.mubr.msk.f32.mxu0 %vm54_vm0, %v35_v5 }
  0x12   :  { %6881 = vmatpush3.bf16.msra.mxu1 %v6878_v19  ;;  %6494 = vmatprep.mubr.msk.f32.mxu1 %vm54_vm0, %v35_v5 }
  0x13   :  { %6889 = vmatpush3.bf16.msra.mxu0 %v6886_v25  ;;  %6526 = vmatprep.subr.mxu1 %v7086_v26 }
  0x14   :  { %6546 = vmatprep.subr.mxu0 %v7086_v26 }
  0x15   :  { %6495 = vmatmul.mubr.msk.f32.vlgmr.msra.gmra.mrb[4].mxu1 %vm54_vm0, %v36_v16 }
  0x16   :  { %6497 = vmatprep.mubr.msk.f32.mxu1 %vm54_vm0, %v37_v21  ;;  %6515 = vmatmul.mubr.msk.f32.vlgmr.msra.gmra.mrb[4].mxu0 %vm54_vm0, %v36_v16 }
  0x17   :  { %6517 = vmatprep.mubr.msk.f32.mxu0 %vm54_vm0, %v37_v21 }
  0x19   :  { %6498 = vmatmul.mubr.msk.f32.gmra.mrb[6].mxu1 %vm54_vm0, %v38_v22 }
  0x1a   :  { %6500 = vmatprep.mubr.msk.f32.mxu1 %vm54_vm0, %v39_v6  ;;  %6518 = vmatmul.mubr.msk.f32.gmra.mrb[6].mxu0 %vm54_vm0, %v38_v22 }
  0x1b   :  { %6520 = vmatprep.mubr.msk.f32.mxu0 %vm54_vm0, %v39_v6 }
  0x1d   :  { %6501 = vmatmul.mubr.msk.f32.gmra.mrb[8].mxu1 %vm54_vm0, %v40_v17 }
  0x1e   :  { %6503 = vmatprep.mubr.msk.f32.mxu1 %vm54_vm0, %v41_v18  ;;  %6521 = vmatmul.mubr.msk.f32.gmra.mrb[8].mxu0 %vm54_vm0, %v40_v17 }
  0x1f   :  { %6523 = vmatprep.mubr.msk.f32.mxu0 %vm54_vm0, %v41_v18 }
  0x21   :  { %6504 = vmatmul.mubr.msk.f32.gmra.mrb[10].mxu1 %vm54_vm0, %v42_v20 }
  0x22   :  { %6528 = vmatprep.mubr.msk.f32.mxu1 %vm7087_vm1, %v7086_v26  ;;  %6524 = vmatmul.mubr.msk.f32.gmra.mrb[10].mxu0 %vm54_vm0, %v42_v20 }
  0x23   :  { %6548 = vmatprep.mubr.msk.f32.mxu0 %vm7087_vm1, %v7086_v26 }
  0xdf   :  { %v6476_v28 = vpop.f32.mrb[0].mxu0 }
  0xe0   :  { %v6482_v29 = vpop.f32.mrb[0].mxu1  ;;  %v7245_v30 = vadd.f32 %v6476_v28, %v7242_v27  ;;  %v145_v32 = vpop.f32.mrb[1].mxu0 }
  0xe1   :  { %v165_v31 = vpop.f32.mrb[1].mxu1  ;;  %v7250_v33 = vadd.f32 %v7242_v27, %v145_v32  ;;  %v7332_v59 = vadd.f32 %v6482_v29, %v7242_v27 }
  0xe2   :  { %1767 = vrot.lane.b32.xlu1 %v7245_v30, %s7088_s30  ;;  %v7289_v51 = vadd.f32 %v7242_v27, %v165_v31 }
  0xe3   :  { %v6479_v35 = vpop.f32.mrb[2].mxu0 }
  0xe4   :  { %v6485_v34 = vpop.f32.mrb[2].mxu1  ;;  %v155_v37 = vpop.f32.mrb[3].mxu0  ;;  %v7313_v57 = vadd.f32 %v6479_v35, %v7242_v27 }
  0xe5   :  { %v175_v36 = vpop.f32.mrb[3].mxu1  ;;  %v7282_v49 = vadd.f32 %v7242_v27, %v155_v37  ;;  %v7344_v60 = vadd.f32 %v6485_v34, %v7242_v27 }
  0xe6   :  { %1689 = vrot.lane.b32.xlu1 %v7250_v33, %s7088_s30  ;;  %v7310_v56 = vadd.f32 %v7242_v27, %v175_v36 }
  0xe8   :  { %v6496_v39 = vpop.f32.mrb[4].mxu1 }
  0xe9   :  { %v7257_v40 = vadd.f32 %v6496_v39, %v6166_v38  ;;  %v261_v41 = vpop.f32.mrb[5].mxu1  ;;  %v6516_v61 = vpop.f32.mrb[4].mxu0 }
  0xea   :  { %v7259_v42 = vadd.f32 %v6166_v38, %v261_v41  ;;  %v7354_v63 = vadd.f32 %v6516_v61, %v6175_v62  ;;  %v377_v0 = vpop.f32.mrb[5].mxu0 }
  0xeb   :  { %1769 = vrot.lane.b32.xlu1 %v7257_v40, %s7088_s30  ;;  %v7358_v4 = vadd.f32 %v6175_v62, %v377_v0 }
  0xec   :  { %1691 = vrot.lane.b32.xlu0 %v7259_v42, %s7088_s30  ;;  %6527 = vmatpush3.xpose.msk.msra.mxu1 %vm416_vm2, %v7259_v42  ;;  %v6499_v43 = vpop.f32.mrb[6].mxu1 }
  0xed   :  { %v271_v44 = vpop.f32.mrb[7].mxu1  ;;  %6531 = vmatprep.subr.mxu1 %v7086_v26  ;;  %v7294_v53 = vadd.f32 %v6499_v43, %v6166_v38  ;;  %v6519_v1 = vpop.f32.mrb[6].mxu0 }
  0xee   :  { %v7270_v45 = vadd.f32 %v6166_v38, %v271_v44  ;;  %v387_v2 = vpop.f32.mrb[7].mxu0  ;;  %v7360_v5 = vadd.f32 %v6519_v1, %v6175_v62 }
  0xef   :  { %6529 = vmatmul.mubr.msk.f32.vlgmr.msra.gmra.mrb[12].mxu1 %vm416_vm2, %v7250_v33  ;;  %v7362_v6 = vadd.f32 %v6175_v62, %v387_v2 }
  0xf0   :  { %v6502_v46 = vpop.f32.mrb[8].mxu1  ;;  %6532 = vmatpush3.xpose.msk.msra.mxu1 %vm416_vm2, %v7257_v40  ;;  %6533 = vmatprep.mubr.msk.f32.mxu1 %vm7087_vm1, %v7086_v26 }
  0xf1   :  { %v281_v47 = vpop.f32.mrb[9].mxu1  ;;  %6536 = vmatprep.subr.mxu1 %v7086_v26  ;;  %v7303_v55 = vadd.f32 %v6502_v46, %v6166_v38  ;;  %v6522_v3 = vpop.f32.mrb[8].mxu0 }
  0xf2   :  { %v7277_v48 = vadd.f32 %v6166_v38, %v281_v47  ;;  %v7364_v7 = vadd.f32 %v6522_v3, %v6175_v62  ;;  %v397_v8 = vpop.f32.mrb[9].mxu0 }
  0xf3   :  { %6534 = vmatmul.mubr.msk.f32.vlgmr.msra.gmra.mrb[14].mxu1 %vm416_vm2, %v7245_v30  ;;  %v7368_v11 = vadd.f32 %v6175_v62, %v397_v8 }
  0xf4   :  { %v6505_v50 = vpop.f32.mrb[10].mxu1  ;;  %6537 = vmatpush3.xpose.msk.msra.mxu1 %vm416_vm2, %v7270_v45  ;;  %6547 = vmatpush3.xpose.msk.msra.mxu0 %vm416_vm2, %v7277_v48 }
  0xf5   :  { %v291_v52 = vpop.f32.mrb[11].mxu1  ;;  %6538 = vmatprep.mubr.msk.f32.mxu1 %vm7087_vm1, %v7086_v26  ;;  %6541 = vmatprep.subr.mxu1 %v7086_v26  ;;  %v7325_v58 = vadd.f32 %v6505_v50, %v6166_v38  ;;  %v6525_v9 = vpop.f32.mrb[10].mxu0 }
  0xf6   :  { %v7296_v54 = vadd.f32 %v6166_v38, %v291_v52  ;;  %6556 = vmatprep.subr.mxu0 %v7086_v26  ;;  %v407_v10 = vpop.f32.mrb[11].mxu0  ;;  %v7370_v12 = vadd.f32 %v6525_v9, %v6175_v62 }
  0xf7   :  { %6539 = vmatmul.mubr.msk.f32.vlgmr.msra.gmra.mrb[16].mxu1 %vm416_vm2, %v7282_v49  ;;  %6549 = vmatmul.mubr.msk.f32.vlgmr.msra.gmra.mrb[12].mxu0 %vm416_vm2, %v7289_v51  ;;  %v7372_v13 = vadd.f32 %v6175_v62, %v407_v10 }
  0xf8   :  { %6542 = vmatpush3.xpose.msk.msra.mxu1 %vm416_vm2, %v7294_v53  ;;  %6557 = vmatpush3.xpose.msk.msra.mxu0 %vm416_vm2, %v7296_v54 }
  0xf9   :  { %6543 = vmatprep.mubr.msk.f32.mxu1 %vm7087_vm1, %v7086_v26  ;;  %6558 = vmatprep.mubr.msk.f32.mxu0 %vm7087_vm1, %v7086_v26 }
  0xfa   :  { %6551 = vmatprep.subr.mxu1 %v7086_v26  ;;  %6566 = vmatprep.subr.mxu0 %v7086_v26 }
  0xfb   :  { %6544 = vmatmul.mubr.msk.f32.vlgmr.msra.gmra.mrb[18].mxu1 %vm416_vm2, %v7313_v57  ;;  %6559 = vmatmul.mubr.msk.f32.vlgmr.msra.gmra.mrb[14].mxu0 %vm416_vm2, %v7310_v56 }
  0xfc   :  { %6552 = vmatpush3.xpose.msk.msra.mxu1 %vm416_vm2, %v7303_v55  ;;  %6553 = vmatprep.mubr.msk.f32.mxu1 %vm7087_vm1, %v7086_v26 }
  0xfd   :  { %6561 = vmatprep.subr.mxu1 %v7086_v26  ;;  %6568 = vmatprep.mubr.msk.f32.mxu0 %vm7087_vm1, %v7086_v26 }
  0xfe   :  { %6567 = vmatpush3.msra.mxu0 %v7358_v4 }
  0xff   :  { %6554 = vmatmul.mubr.msk.f32.vlgmr.msra.gmra.mrb[20].mxu1 %vm416_vm2, %v7332_v59  ;;  %6576 = vmatprep.subr.mxu0 %v7086_v26 }
 0x100   :  { %6562 = vmatpush3.xpose.msk.msra.mxu1 %vm416_vm2, %v7325_v58  ;;  %6563 = vmatprep.mubr.msk.f32.mxu1 %vm7087_vm1, %v7086_v26 }
 0x101   :  { %6571 = vmatprep.subr.mxu1 %v7086_v26 }
 0x103   :  { %6564 = vmatmul.mubr.msk.f32.vlgmr.msra.gmra.mrb[22].mxu1 %vm416_vm2, %v7344_v60 }
 0x104   :  { %6573 = vmatprep.mubr.msk.f32.mxu1 %vm7087_vm1, %v7086_v26  ;;  %6572 = vmatpush3.msra.mxu1 %v7354_v63 }
 0x105   :  { %6581 = vmatprep.subr.mxu1 %v7086_v26 }
 0x1c2   :  { %v489_v14 = vpop.f32.mrb[12].mxu1 }
 0x1c3   :  { %v1025_v15 = vmul.f32 0.35355338, %v489_v14  ;;  %v6530_v16 = vpop.f32.mrb[13].mxu1 }
 0x1c5   :  { %v1033_v17 = vmul.f32 1.442695, %v1025_v15 }
 0x1c6   :  { %v565_v18 = vpop.f32.mrb[14].mxu1 }
 0x1c7   :  { %6910 = vpow2.f32 %v1033_v17  ;;  %v1026_v19 = vmul.f32 0.35355338, %v565_v18  ;;  %v6535_v20 = vpop.f32.mrb[15].mxu1 }
 0x1c9   :  { %v1035_v21 = vmul.f32 1.442695, %v1026_v19 }
 0x1ca   :  { %v641_v22 = vpop.f32.mrb[16].mxu1  ;;  %v793_v23 = vpop.f32.mrb[12].mxu0 }
 0x1cb   :  { %6912 = vpow2.f32 %v1035_v21  ;;  %v1027_v24 = vmul.f32 0.35355338, %v641_v22  ;;  %v1029_v25 = vmul.f32 0.35355338, %v793_v23  ;;  %v6550_v27 = vpop.f32.mrb[13].mxu0  ;;  %v6540_v28 = vpop.f32.mrb[17].mxu1 }
 0x1cc   :  { %v7432_v23 = vpop.permute.xlu1 %1767 }
 0x1cd   :  { %v1037_v29 = vmul.f32 1.442695, %v1027_v24  ;;  %v1041_v31 = vmul.f32 1.442695, %v1029_v25  ;;  %v7436_v24 = vpop.permute.xlu0 %1691 }
 0x1ce   :  { %v945_v32 = vpop.f32.mrb[14].mxu0  ;;  %v717_v34 = vpop.f32.mrb[18].mxu1 }
 0x1cf   :  { %6914 = vpow2.f32 %v1037_v29  ;;  %v6560_v35 = vpop.f32.mrb[15].mxu0  ;;  %v6545_v36 = vpop.f32.mrb[19].mxu1  ;;  %v1028_v0 = vmul.f32 0.35355338, %v717_v34  ;;  %v1031_v1 = vmul.f32 0.35355338, %v945_v32 }
 0x1d0   :  { %6916 = vpow2.f32 %v1041_v31  ;;  %v7438_v25 = vpop.permute.xlu1 %1689 }
 0x1d1   :  { %v7374_v37 = vpop.eup %6910  ;;  %v1039_v2 = vmul.f32 1.442695, %v1028_v0  ;;  %v1045_v8 = vmul.f32 1.442695, %v1031_v1 }
 0x1d2   :  { %v869_v38 = vpop.f32.mrb[20].mxu1  ;;  %v1049_v39 = vsel %vm416_vm2, %v7374_v37, 0.0 }
 0x1d3   :  { %1050 = vadd.xlane.f32.xlu0 %v1049_v39  ;;  %v6555_v41 = vpop.f32.mrb[21].mxu1  ;;  %v1030_v3 = vmul.f32 0.35355338, %v869_v38  ;;  %6918 = vpow2.f32 %v1039_v2 }
 0x1d4   :  { %6920 = vpow2.f32 %v1045_v8  ;;  %v7444_v29 = vpop.permute.xlu1 %1769 }
 0x1d5   :  { %v7378_v43 = vpop.eup %6912  ;;  %v1043_v9 = vmul.f32 1.442695, %v1030_v3 }
 0x1d6   :  { %v1021_v44 = vpop.f32.mrb[22].mxu1  ;;  %v1052_v46 = vsel %vm416_vm2, %v7378_v43, 0.0 }
 0x1d7   :  { %1053 = vadd.xlane.f32.xlu0 %v1052_v46  ;;  %v6565_v47 = vpop.f32.mrb[23].mxu1  ;;  %6922 = vpow2.f32 %v1043_v9  ;;  %v1032_v19 = vmul.f32 0.35355338, %v1021_v44 }
 0x1d9   :  { %v7382_v50 = vpop.eup %6914  ;;  %v1047_v20 = vmul.f32 1.442695, %v1032_v19 }
 0x1da   :  { %v7384_v52 = vpop.eup %6916  ;;  %v1055_v61 = vsel %vm416_vm2, %v7382_v50, 0.0 }
 0x1db   :  { %v1061_v62 = vsel %vm416_vm2, %v7384_v52, 0.0  ;;  %1056 = vadd.xlane.f32.xlu1 %v1055_v61  ;;  %6924 = vpow2.f32 %v1047_v20 }
 0x1dc   :  { %1062 = vadd.xlane.f32.xlu0 %v1061_v62 }
 0x1dd   :  { %v7394_v10 = vpop.eup %6918 }
 0x1de   :  { %v7396_v14 = vpop.eup %6920  ;;  %v1058_v15 = vsel %vm416_vm2, %v7394_v10, 0.0 }
 0x1df   :  { %v1067_v17 = vsel %vm416_vm2, %v7396_v14, 0.0 }
 0x1e1   :  { %v7400_v16 = vpop.eup %6922 }
 0x1e2   :  { %v1064_v18 = vsel %vm416_vm2, %v7400_v16, 0.0 }
 0x1e5   :  { %v7424_v21 = vpop.eup %6924 }
 0x1e6   :  { %v1070_v22 = vsel %vm416_vm2, %v7424_v21, 0.0 }
 0x1ec   :  { %1925 = vrot.lane.b32.xlu1 %v7294_v53, %s7088_s30 }
 0x1f2   :  { %1847 = vrot.lane.b32.xlu0 %v7270_v45, %s7088_s30 }
 0x210   :  { %1059 = vadd.xlane.f32.xlu1 %v1058_v15 }
 0x211   :  { %1068 = vadd.xlane.f32.xlu0 %v1067_v17 }
 0x214   :  { %1065 = vadd.xlane.f32.xlu1 %v1064_v18 }
 0x225   :  { %1923 = vrot.lane.b32.xlu1 %v7313_v57, %s7088_s30 }
 0x227   :  { %1845 = vrot.lane.b32.xlu0 %v7282_v49, %s7088_s30 }
 0x22b   :  { %2003 = vrot.lane.b32.xlu0 %v7277_v48, %s7088_s30 }
 0x22f   :  { %2001 = vrot.lane.b32.xlu0 %v7289_v51, %s7088_s30 }
 0x233   :  { %2159 = vrot.lane.b32.xlu0 %v7296_v54, %s7088_s30 }
 0x237   :  { %2157 = vrot.lane.b32.xlu0 %v7310_v56, %s7088_s30 }
 0x23b   :  { %2386 = vrot.lane.b32.xlu0 %v7358_v4, %s7088_s30 }
 0x23f   :  { %2694 = vrot.lane.b32.xlu0 %v7368_v11, %s7088_s30 }
 0x243   :  { %2848 = vrot.lane.b32.xlu0 %v7372_v13, %s7088_s30 }
 0x247   :  { %3044 = vrot.lane.b32.xlu0 %v7259_v42, %s7089_s6 }
 0x249   :  { %1071 = vadd.xlane.f32.xlu1 %v1070_v22 }
 0x24b   :  { %3042 = vrot.lane.b32.xlu0 %v7250_v33, %s7089_s6 }
 0x25a   :  { %2081 = vrot.lane.b32.xlu1 %v7303_v55, %s7088_s30 }
 0x25e   :  { %2079 = vrot.lane.b32.xlu1 %v7332_v59, %s7088_s30 }
 0x260   :  { %v1051_v27 = vpop.xlane.xlu0 %1050 }
 0x261   :  { %v1073_v28 = vadd.f32 1e-08, %v1051_v27 }
 0x262   :  { %2237 = vrot.lane.b32.xlu1 %v7325_v58, %s7088_s30 }
 0x263   :  { %6926 = vrcp.f32 %v1073_v28 }
 0x264   :  { %v1054_v31 = vpop.xlane.xlu0 %1053 }
 0x265   :  { %v1074_v32 = vadd.f32 1e-08, %v1054_v31 }
 0x266   :  { %2235 = vrot.lane.b32.xlu1 %v7344_v60, %s7088_s30 }
 0x267   :  { %6928 = vrcp.f32 %v1074_v32 }
 0x268   :  { %v1057_v34 = vpop.xlane.xlu1 %1056 }
 0x269   :  { %v1063_v35 = vpop.xlane.xlu0 %1062  ;;  %v1075_v36 = vadd.f32 1e-08, %v1057_v34 }
 0x26a   :  { %v1077_v38 = vadd.f32 1e-08, %v1063_v35  ;;  %2463 = vrot.lane.b32.xlu1 %v7354_v63, %s7088_s30 }
 0x26b   :  { %6930 = vrcp.f32 %v1075_v36 }
 0x26c   :  { %6932 = vrcp.f32 %v1077_v38 }
 0x26d   :  { %v6927_v39 = vpop.eup %6926  ;;  %v1848_v62 = vpop.permute.xlu0 %1847 }
 0x26e   :  { %2540 = vrot.lane.b32.xlu1 %v7362_v6, %s7088_s30  ;;  %v1089_v41 = vmul.f32 %v6927_v39, %v7374_v37 }
 0x270   :  { %6569 = vmatmul.mubr.msk.f32.vlgmr.msra.gmra.mrb[16].mxu0 %vm416_vm2, %v1089_v41 }
 0x271   :  { %v6929_v44 = vpop.eup %6928  ;;  %6577 = vmatpush3.msra.mxu0 %v7362_v6  ;;  %6578 = vmatprep.mubr.msk.f32.mxu0 %vm7087_vm1, %v7086_v26 }
 0x272   :  { %2617 = vrot.lane.b32.xlu1 %v7360_v5, %s7088_s30  ;;  %v1090_v46 = vmul.f32 %v6929_v44, %v7378_v43  ;;  %6586 = vmatprep.subr.mxu0 %v7086_v26 }
 0x274   :  { %6574 = vmatmul.mubr.msk.f32.vlgmr.msra.gmra.mrb[24].mxu1 %vm416_vm2, %v1090_v46 }
 0x275   :  { %v6931_v47 = vpop.eup %6930  ;;  %6582 = vmatpush3.msra.mxu1 %v7360_v5  ;;  %6583 = vmatprep.mubr.msk.f32.mxu1 %vm7087_vm1, %v7086_v26 }
 0x276   :  { %2771 = vrot.lane.b32.xlu1 %v7364_v7, %s7088_s30  ;;  %v1091_v37 = vmul.f32 %v6931_v47, %v7382_v50  ;;  %6591 = vmatprep.subr.mxu1 %v7086_v26  ;;  %v6933_v61 = vpop.eup %6932  ;;  %v7486_v50 = vpop.permute.xlu1 %1925 }
 0x277   :  { %v1093_v43 = vmul.f32 %v6933_v61, %v7384_v52 }
 0x278   :  { %6579 = vmatmul.mubr.msk.f32.vlgmr.msra.gmra.mrb[18].mxu0 %vm416_vm2, %v1091_v37 }
 0x279   :  { %6587 = vmatpush3.msra.mxu0 %v7368_v11  ;;  %6588 = vmatprep.mubr.msk.f32.mxu0 %vm7087_vm1, %v7086_v26 }
 0x27a   :  { %2925 = vrot.lane.b32.xlu1 %v7370_v12, %s7088_s30  ;;  %6596 = vmatprep.subr.mxu0 %v7086_v26 }
 0x27c   :  { %6589 = vmatmul.mubr.msk.f32.vlgmr.msra.gmra.mrb[20].mxu0 %vm416_vm2, %v1093_v43 }
 0x27d   :  { %6597 = vmatpush3.msra.mxu0 %v7372_v13  ;;  %6598 = vmatprep.mubr.msk.f32.mxu0 %vm7087_vm1, %v7086_v26 }
 0x27e   :  { %3122 = vrot.lane.b32.xlu1 %v7257_v40, %s7089_s6  ;;  %6606 = vmatprep.subr.mxu0 %v7086_v26 }
 0x282   :  { %3120 = vrot.lane.b32.xlu1 %v7245_v30, %s7089_s6 }
 0x29d   :  { %v1060_v0 = vpop.xlane.xlu1 %1059 }
 0x29e   :  { %v1069_v52 = vpop.xlane.xlu0 %1068  ;;  %v1076_v1 = vadd.f32 1e-08, %v1060_v0 }
 0x29f   :  { %v1079_v2 = vadd.f32 1e-08, %v1069_v52 }
 0x2a0   :  { %6934 = vrcp.f32 %v1076_v1 }
 0x2a1   :  { %6936 = vrcp.f32 %v1079_v2  ;;  %v1066_v3 = vpop.xlane.xlu1 %1065 }
 0x2a2   :  { %v1846_v8 = vpop.permute.xlu0 %1845  ;;  %v1078_v9 = vadd.f32 1e-08, %v1066_v3 }
 0x2a4   :  { %6938 = vrcp.f32 %v1078_v9 }
 0x2a6   :  { %v2004_v15 = vpop.permute.xlu0 %2003 }
 0x2aa   :  { %v6935_v17 = vpop.eup %6934  ;;  %v2002_v20 = vpop.permute.xlu0 %2001 }
 0x2ab   :  { %v6937_v18 = vpop.eup %6936  ;;  %v1092_v19 = vmul.f32 %v6935_v17, %v7394_v10 }
 0x2ac   :  { %v1095_v22 = vmul.f32 %v6937_v18, %v7396_v14 }
 0x2ad   :  { %6584 = vmatmul.mubr.msk.f32.vlgmr.msra.gmra.mrb[26].mxu1 %vm416_vm2, %v1092_v19 }
 0x2ae   :  { %v6939_v27 = vpop.eup %6938  ;;  %6592 = vmatpush3.msra.mxu1 %v7364_v7  ;;  %6599 = vmatmul.mubr.msk.f32.vlgmr.msra.gmra.mrb[22].mxu0 %vm416_vm2, %v1095_v22  ;;  %v2160_v10 = vpop.permute.xlu0 %2159 }
 0x2af   :  { %6607 = vmatpush3.xpose.msk.msra.mxu0 %vm416_vm2, %v7436_v24  ;;  %6593 = vmatprep.mubr.msk.f32.mxu1 %vm7087_vm1, %v7086_v26  ;;  %v1094_v28 = vmul.f32 %v6939_v27, %v7400_v16  ;;  %v1924_v24 = vpop.permute.xlu1 %1923 }
 0x2b0   :  { %6601 = vmatprep.subr.mxu1 %v7086_v26  ;;  %6608 = vmatprep.mubr.msk.f32.mxu0 %vm7087_vm1, %v7086_v26 }
 0x2b1   :  { %6616 = vmatprep.subr.mxu0 %v7086_v26  ;;  %6594 = vmatmul.mubr.msk.f32.vlgmr.msra.gmra.mrb[28].mxu1 %vm416_vm2, %v1094_v28 }
 0x2b2   :  { %6602 = vmatpush3.msra.mxu1 %v7370_v12  ;;  %6609 = vmatmul.mubr.msk.f32.vlgmr.msra.gmra.mrb[24].mxu0 %vm416_vm2, %v7438_v25  ;;  %v2158_v14 = vpop.permute.xlu0 %2157 }
 0x2b3   :  { %6617 = vmatpush3.xpose.msk.msra.mxu0 %vm416_vm2, %v1848_v62  ;;  %6618 = vmatprep.mubr.msk.f32.mxu0 %vm7087_vm1, %v7086_v26 }
 0x2b4   :  { %6626 = vmatprep.subr.mxu0 %v7086_v26  ;;  %6603 = vmatprep.mubr.msk.f32.mxu1 %vm7087_vm1, %v7086_v26 }
 0x2b5   :  { %6611 = vmatprep.subr.mxu1 %v7086_v26 }
 0x2b6   :  { %6619 = vmatmul.mubr.msk.f32.vlgmr.msra.gmra.mrb[26].mxu0 %vm416_vm2, %v1846_v8  ;;  %v2387_v16 = vpop.permute.xlu0 %2386 }
 0x2b7   :  { %6627 = vmatpush3.xpose.msk.msra.mxu0 %vm416_vm2, %v2004_v15  ;;  %6628 = vmatprep.mubr.msk.f32.mxu0 %vm7087_vm1, %v7086_v26 }
 0x2b8   :  { %6636 = vmatprep.subr.mxu0 %v7086_v26 }
 0x2ba   :  { %6629 = vmatmul.mubr.msk.f32.vlgmr.msra.gmra.mrb[28].mxu0 %vm416_vm2, %v2002_v20 }
 0x2bb   :  { %6637 = vmatpush3.xpose.msk.msra.mxu0 %vm416_vm2, %v2160_v10  ;;  %6638 = vmatprep.mubr.msk.f32.mxu0 %vm7087_vm1, %v7086_v26 }
 0x2bc   :  { %6646 = vmatprep.subr.mxu0 %v7086_v26 }
 0x2be   :  { %6639 = vmatmul.mubr.msk.f32.vlgmr.msra.gmra.mrb[30].mxu0 %vm416_vm2, %v2158_v14 }
 0x2bf   :  { %6647 = vmatpush3.msra.mxu0 %v2387_v16  ;;  %6648 = vmatprep.mubr.msk.f32.mxu0 %vm7087_vm1, %v7086_v26 }
 0x2c0   :  { %6656 = vmatprep.subr.mxu0 %v7086_v26 }
 0x2d6   :  { %v1072_v25 = vpop.xlane.xlu1 %1071 }
 0x2d7   :  { %v1080_v31 = vadd.f32 1e-08, %v1072_v25 }
 0x2d9   :  { %6940 = vrcp.f32 %v1080_v31 }
 0x2da   :  { %v2082_v32 = vpop.permute.xlu1 %2081 }
 0x2de   :  { %v2080_v35 = vpop.permute.xlu1 %2079 }
 0x2e2   :  { %v2238_v38 = vpop.permute.xlu1 %2237 }
 0x2e3   :  { %v6941_v34 = vpop.eup %6940 }
 0x2e4   :  { %v1096_v36 = vmul.f32 %v6941_v34, %v7424_v21 }
 0x2e6   :  { %6604 = vmatmul.mubr.msk.f32.vlgmr.msra.gmra.mrb[30].mxu1 %vm416_vm2, %v1096_v36  ;;  %v2236_v21 = vpop.permute.xlu1 %2235 }
 0x2e7   :  { %6612 = vmatpush3.xpose.msk.msra.mxu1 %vm416_vm2, %v7444_v29  ;;  %6613 = vmatprep.mubr.msk.f32.mxu1 %vm7087_vm1, %v7086_v26 }
 0x2e8   :  { %6621 = vmatprep.subr.mxu1 %v7086_v26 }
 0x2ea   :  { %6614 = vmatmul.mubr.msk.f32.vlgmr.msra.gmra.mrb[32].mxu1 %vm416_vm2, %v7432_v23  ;;  %v2464_v23 = vpop.permute.xlu1 %2463 }
 0x2eb   :  { %6622 = vmatpush3.xpose.msk.msra.mxu1 %vm416_vm2, %v7486_v50  ;;  %6623 = vmatprep.mubr.msk.f32.mxu1 %vm7087_vm1, %v7086_v26 }
 0x2ec   :  { %6631 = vmatprep.subr.mxu1 %v7086_v26 }
 0x2ee   :  { %6624 = vmatmul.mubr.msk.f32.vlgmr.msra.gmra.mrb[34].mxu1 %vm416_vm2, %v1924_v24 }
 0x2ef   :  { %6632 = vmatpush3.xpose.msk.msra.mxu1 %vm416_vm2, %v2082_v32  ;;  %6633 = vmatprep.mubr.msk.f32.mxu1 %vm7087_vm1, %v7086_v26 }
 0x2f0   :  { %6641 = vmatprep.subr.mxu1 %v7086_v26 }
 0x2f2   :  { %6634 = vmatmul.mubr.msk.f32.vlgmr.msra.gmra.mrb[36].mxu1 %vm416_vm2, %v2080_v35 }
 0x2f3   :  { %6642 = vmatpush3.xpose.msk.msra.mxu1 %vm416_vm2, %v2238_v38  ;;  %6643 = vmatprep.mubr.msk.f32.mxu1 %vm7087_vm1, %v7086_v26 }
 0x2f4   :  { %6651 = vmatprep.subr.mxu1 %v7086_v26 }
 0x2f6   :  { %6644 = vmatmul.mubr.msk.f32.vlgmr.msra.gmra.mrb[38].mxu1 %vm416_vm2, %v2236_v21 }
 0x2f7   :  { %6652 = vmatpush3.msra.mxu1 %v2464_v23  ;;  %6653 = vmatprep.mubr.msk.f32.mxu1 %vm7087_vm1, %v7086_v26 }
 0x2f8   :  { %6661 = vmatprep.subr.mxu1 %v7086_v26 }
 0x343   :  { %v1166_v29 = vpop.f32.mrb[16].mxu0 }
 0x344   :  { %1681 = vst.msk [vmem:[#allocation2] sm:$0xff] %vm416_vm2, %v1166_v29  ;;  %v6570_v39 = vpop.f32.mrb[17].mxu0 }
 0x347   :  { %v1239_v41 = vpop.f32.mrb[24].mxu1 }
 0x348   :  { %1682 = vst.msk [vmem:[#allocation2 + $0x8] sm:$0xff] %vm416_vm2, %v1239_v41  ;;  %v6575_v44 = vpop.f32.mrb[25].mxu1 }
 0x34b   :  { %v1312_v46 = vpop.f32.mrb[18].mxu0 }
 0x34c   :  { %1683 = vst.msk [vmem:[#allocation2 + $0x10] sm:$0xff] %vm416_vm2, %v1312_v46  ;;  %v6580_v47 = vpop.f32.mrb[19].mxu0 }
 0x34f   :  { %v1458_v37 = vpop.f32.mrb[20].mxu0 }
 0x350   :  { %1685 = vst.msk [vmem:[#allocation2 + $0x20] sm:$0xff] %vm416_vm2, %v1458_v37  ;;  %v6590_v61 = vpop.f32.mrb[21].mxu0 }
 0x380   :  { %v1385_v43 = vpop.f32.mrb[26].mxu1 }
 0x381   :  { %1684 = vst.msk [vmem:[#allocation2 + $0x18] sm:$0xff] %vm416_vm2, %v1385_v43  ;;  %v1604_v50 = vpop.f32.mrb[22].mxu0  ;;  %v6585_v62 = vpop.f32.mrb[27].mxu1 }
 0x382   :  { %1687 = vst.msk [vmem:[#allocation2 + $0x30] sm:$0xff] %vm416_vm2, %v1604_v50  ;;  %v6600_v0 = vpop.f32.mrb[23].mxu0 }
 0x384   :  { %v1531_v52 = vpop.f32.mrb[28].mxu1 }
 0x385   :  { %1686 = vst.msk [vmem:[#allocation2 + $0x28] sm:$0xff] %vm416_vm2, %v1531_v52  ;;  %v1763_v1 = vpop.f32.mrb[24].mxu0  ;;  %v6595_v2 = vpop.f32.mrb[29].mxu1 }
 0x386   :  { %v2313_v3 = vmul.f32 0.35355338, %v1763_v1  ;;  %v6610_v8 = vpop.f32.mrb[25].mxu0 }
 0x388   :  { %v2321_v9 = vmul.f32 1.442695, %v2313_v3 }
 0x389   :  { %v1919_v15 = vpop.f32.mrb[26].mxu0 }
 0x38a   :  { %6942 = vpow2.f32 %v2321_v9  ;;  %v2315_v17 = vmul.f32 0.35355338, %v1919_v15  ;;  %v6620_v18 = vpop.f32.mrb[27].mxu0 }
 0x38c   :  { %v2325_v19 = vmul.f32 1.442695, %v2315_v17 }
 0x38d   :  { %v2075_v20 = vpop.f32.mrb[28].mxu0 }
 0x38e   :  { %6944 = vpow2.f32 %v2325_v19  ;;  %v6630_v22 = vpop.f32.mrb[29].mxu0  ;;  %v2317_v36 = vmul.f32 0.35355338, %v2075_v20  ;;  %v2695_v19 = vpop.permute.xlu0 %2694 }
 0x390   :  { %v2329_v39 = vmul.f32 1.442695, %v2317_v36 }
 0x391   :  { %v2231_v27 = vpop.f32.mrb[30].mxu0 }
 0x392   :  { %v6640_v28 = vpop.f32.mrb[31].mxu0  ;;  %v2319_v3 = vmul.f32 0.35355338, %v2231_v27  ;;  %v7595_v20 = vpop.permute.xlu0 %2848 }
 0x394   :  { %v7562_v10 = vpop.eup %6942  ;;  %v2333_v8 = vmul.f32 1.442695, %v2319_v3 }
 0x395   :  { %v2337_v14 = vsel %vm416_vm2, %v7562_v10, 0.0 }
 0x396   :  { %2338 = vadd.xlane.f32.xlu0 %v2337_v14  ;;  %v7599_v22 = vpop.permute.xlu0 %3044 }
 0x398   :  { %v7566_v16 = vpop.eup %6944 }
 0x399   :  { %v2343_v24 = vsel %vm416_vm2, %v7566_v16, 0.0 }
 0x39a   :  { %2344 = vadd.xlane.f32.xlu0 %v2343_v24  ;;  %v7601_v27 = vpop.permute.xlu0 %3042 }
 0x3b9   :  { %v1677_v25 = vpop.f32.mrb[30].mxu1 }
 0x3ba   :  { %1688 = vst.msk [vmem:[#allocation2 + $0x38] sm:$0xff] %vm416_vm2, %v1677_v25  ;;  %v6605_v31 = vpop.f32.mrb[31].mxu1 }
 0x3bd   :  { %v1841_v32 = vpop.f32.mrb[32].mxu1 }
 0x3be   :  { %v2314_v34 = vmul.f32 0.35355338, %v1841_v32  ;;  %v6615_v35 = vpop.f32.mrb[33].mxu1 }
 0x3c0   :  { %v2323_v38 = vmul.f32 1.442695, %v2314_v34 }
 0x3c1   :  { %v1997_v21 = vpop.f32.mrb[34].mxu1 }
 0x3c2   :  { %6946 = vpow2.f32 %v2323_v38  ;;  %v2316_v23 = vmul.f32 0.35355338, %v1997_v21  ;;  %v6625_v29 = vpop.f32.mrb[35].mxu1  ;;  %v2541_v38 = vpop.permute.xlu1 %2540 }
 0x3c4   :  { %v2327_v41 = vmul.f32 1.442695, %v2316_v23 }
 0x3c5   :  { %v2153_v44 = vpop.f32.mrb[36].mxu1 }
 0x3c6   :  { %6948 = vpow2.f32 %v2327_v41  ;;  %v6635_v46 = vpop.f32.mrb[37].mxu1  ;;  %v2318_v1 = vmul.f32 0.35355338, %v2153_v44  ;;  %v2618_v29 = vpop.permute.xlu1 %2617 }
 0x3c7   :  { %6950 = vpow2.f32 %v2329_v39 }
 0x3c8   :  { %v2331_v2 = vmul.f32 1.442695, %v2318_v1 }
 0x3c9   :  { %v2309_v47 = vpop.f32.mrb[38].mxu1 }
 0x3ca   :  { %v6645_v37 = vpop.f32.mrb[39].mxu1  ;;  %6952 = vpow2.f32 %v2331_v2  ;;  %v2320_v28 = vmul.f32 0.35355338, %v2309_v47 }
 0x3cb   :  { %6954 = vpow2.f32 %v2333_v8 }
 0x3cc   :  { %v7571_v61 = vpop.eup %6946  ;;  %v2335_v25 = vmul.f32 1.442695, %v2320_v28 }
 0x3cd   :  { %v2340_v43 = vsel %vm416_vm2, %v7571_v61, 0.0 }
 0x3ce   :  { %2341 = vadd.xlane.f32.xlu1 %v2340_v43 }
 0x3d0   :  { %v7575_v50 = vpop.eup %6948 }
 0x3d1   :  { %v2346_v62 = vsel %vm416_vm2, %v7575_v50, 0.0  ;;  %v7579_v0 = vpop.eup %6950 }
 0x3d2   :  { %2347 = vadd.xlane.f32.xlu0 %v2346_v62  ;;  %v2349_v52 = vsel %vm416_vm2, %v7579_v0, 0.0 }
 0x3d4   :  { %v7587_v9 = vpop.eup %6952 }
 0x3d5   :  { %v2352_v15 = vsel %vm416_vm2, %v7587_v9, 0.0  ;;  %v7591_v17 = vpop.eup %6954 }
 0x3d6   :  { %2350 = vadd.xlane.f32.xlu0 %v2349_v52  ;;  %v2355_v18 = vsel %vm416_vm2, %v7591_v17, 0.0 }
 0x3df   :  { %3278 = vrot.lane.b32.xlu1 %v7294_v53, %s7089_s6 }
 0x3ec   :  { %3200 = vrot.lane.b32.xlu0 %v7270_v45, %s7089_s6 }
 0x403   :  { %2353 = vadd.xlane.f32.xlu1 %v2352_v15 }
 0x40b   :  { %2356 = vadd.xlane.f32.xlu0 %v2355_v18 }
 0x414   :  { %3276 = vrot.lane.b32.xlu1 %v7313_v57, %s7089_s6 }
 0x421   :  { %3198 = vrot.lane.b32.xlu0 %v7282_v49, %s7089_s6 }
 0x423   :  { %v2339_v14 = vpop.xlane.xlu0 %2338 }
 0x424   :  { %v2361_v24 = vadd.f32 1e-08, %v2339_v14 }
 0x425   :  { %3356 = vrot.lane.b32.xlu0 %v7277_v48, %s7089_s6 }
 0x426   :  { %6956 = vrcp.f32 %v2361_v24 }
 0x427   :  { %v2345_v31 = vpop.xlane.xlu0 %2344  ;;  %6958 = vpow2.f32 %v2335_v25 }
 0x428   :  { %v2363_v32 = vadd.f32 1e-08, %v2345_v31 }
 0x429   :  { %3354 = vrot.lane.b32.xlu0 %v7289_v51, %s7089_s6 }
 0x42a   :  { %6960 = vrcp.f32 %v2363_v32 }
 0x42d   :  { %3512 = vrot.lane.b32.xlu0 %v7296_v54, %s7089_s6 }
 0x430   :  { %v6957_v34 = vpop.eup %6956 }
 0x431   :  { %3510 = vrot.lane.b32.xlu0 %v7310_v56, %s7089_s6  ;;  %v2377_v35 = vmul.f32 %v6957_v34, %v7562_v10  ;;  %v7614_v36 = vpop.eup %6958 }
 0x432   :  { %v2358_v10 = vsel %vm416_vm2, %v7614_v36, 0.0 }
 0x433   :  { %6649 = vmatmul.mubr.msk.f32.vlgmr.msra.gmra.mrb[32].mxu0 %vm416_vm2, %v2377_v35 }
 0x434   :  { %v6961_v21 = vpop.eup %6960  ;;  %6657 = vmatpush3.msra.mxu0 %v2541_v38  ;;  %6658 = vmatprep.mubr.msk.f32.mxu0 %vm7087_vm1, %v7086_v26 }
 0x435   :  { %6666 = vmatprep.subr.mxu0 %v7086_v26  ;;  %3738 = vrot.lane.b32.xlu0 %v7358_v4, %s7089_s6  ;;  %v2379_v23 = vmul.f32 %v6961_v21, %v7566_v16  ;;  %v2772_v16 = vpop.permute.xlu1 %2771 }
 0x437   :  { %6659 = vmatmul.mubr.msk.f32.vlgmr.msra.gmra.mrb[34].mxu0 %vm416_vm2, %v2379_v23 }
 0x438   :  { %6667 = vmatpush3.msra.mxu0 %v2695_v19  ;;  %2359 = vadd.xlane.f32.xlu1 %v2358_v10 }
 0x439   :  { %4042 = vrot.lane.b32.xlu0 %v7368_v11, %s7089_s6  ;;  %6668 = vmatprep.mubr.msk.f32.mxu0 %vm7087_vm1, %v7086_v26  ;;  %v2926_v39 = vpop.permute.xlu1 %2925 }
 0x43a   :  { %6676 = vmatprep.subr.mxu0 %v7086_v26 }
 0x43d   :  { %4194 = vrot.lane.b32.xlu0 %v7372_v13, %s7089_s6  ;;  %v7643_v41 = vpop.permute.xlu1 %3122 }
 0x441   :  { %4389 = vrot.lane.b32.xlu0 %v7259_v42, %s7090_s13  ;;  %v7649_v42 = vpop.permute.xlu1 %3120 }
 0x445   :  { %4387 = vrot.lane.b32.xlu0 %v7250_v33, %s7090_s13 }
 0x449   :  { %4545 = vrot.lane.b32.xlu0 %v7270_v45, %s7090_s13  ;;  %3434 = vrot.lane.b32.xlu1 %v7303_v55, %s7089_s6 }
 0x44d   :  { %3432 = vrot.lane.b32.xlu1 %v7332_v59, %s7089_s6 }
 0x451   :  { %3590 = vrot.lane.b32.xlu1 %v7325_v58, %s7089_s6 }
 0x455   :  { %3588 = vrot.lane.b32.xlu1 %v7344_v60, %s7089_s6 }
 0x459   :  { %3814 = vrot.lane.b32.xlu1 %v7354_v63, %s7089_s6 }
 0x45b   :  { %v2342_v33 = vpop.xlane.xlu1 %2341 }
 0x45c   :  { %v2362_v45 = vadd.f32 1e-08, %v2342_v33 }
 0x45d   :  { %3890 = vrot.lane.b32.xlu1 %v7362_v6, %s7089_s6 }
 0x45e   :  { %6962 = vrcp.f32 %v2362_v45 }
 0x45f   :  { %v2348_v44 = vpop.xlane.xlu0 %2347 }
 0x460   :  { %v2364_v46 = vadd.f32 1e-08, %v2348_v44 }
 0x461   :  { %3966 = vrot.lane.b32.xlu1 %v7360_v5, %s7089_s6 }
 0x462   :  { %6964 = vrcp.f32 %v2364_v46 }
 0x463   :  { %v2351_v47 = vpop.xlane.xlu0 %2350 }
 0x464   :  { %v2365_v37 = vadd.f32 1e-08, %v2351_v47 }
 0x465   :  { %4118 = vrot.lane.b32.xlu1 %v7364_v7, %s7089_s6 }
 0x466   :  { %6966 = vrcp.f32 %v2365_v37 }
 0x468   :  { %v6963_v43 = vpop.eup %6962 }
 0x469   :  { %4270 = vrot.lane.b32.xlu1 %v7370_v12, %s7089_s6  ;;  %v2378_v62 = vmul.f32 %v6963_v43, %v7571_v61 }
 0x46b   :  { %6654 = vmatmul.mubr.msk.f32.vlgmr.msra.gmra.mrb[40].mxu1 %vm416_vm2, %v2378_v62 }
 0x46c   :  { %v6965_v52 = vpop.eup %6964  ;;  %6662 = vmatpush3.msra.mxu1 %v2618_v29  ;;  %6663 = vmatprep.mubr.msk.f32.mxu1 %vm7087_vm1, %v7086_v26 }
 0x46d   :  { %4467 = vrot.lane.b32.xlu1 %v7257_v40, %s7090_s13  ;;  %6671 = vmatprep.subr.mxu1 %v7086_v26  ;;  %v2380_v1 = vmul.f32 %v6965_v52, %v7575_v50  ;;  %v3279_v40 = vpop.permute.xlu1 %3278 }
 0x46f   :  { %6664 = vmatmul.mubr.msk.f32.vlgmr.msra.gmra.mrb[42].mxu1 %vm416_vm2, %v2380_v1 }
 0x470   :  { %v6967_v2 = vpop.eup %6966  ;;  %6672 = vmatpush3.msra.mxu1 %v2772_v16  ;;  %6673 = vmatprep.mubr.msk.f32.mxu1 %vm7087_vm1, %v7086_v26 }
 0x471   :  { %4465 = vrot.lane.b32.xlu1 %v7245_v30, %s7090_s13  ;;  %v2381_v61 = vmul.f32 %v6967_v2, %v7579_v0  ;;  %6681 = vmatprep.subr.mxu1 %v7086_v26  ;;  %v3201_v30 = vpop.permute.xlu0 %3200 }
 0x473   :  { %6669 = vmatmul.mubr.msk.f32.vlgmr.msra.gmra.mrb[36].mxu0 %vm416_vm2, %v2381_v61 }
 0x474   :  { %6677 = vmatpush3.msra.mxu0 %v7595_v20  ;;  %6678 = vmatprep.mubr.msk.f32.mxu0 %vm7087_vm1, %v7086_v26 }
 0x475   :  { %4623 = vrot.lane.b32.xlu1 %v7294_v53, %s7090_s13  ;;  %6686 = vmatprep.subr.mxu0 %v7086_v26 }
 0x490   :  { %v2354_v50 = vpop.xlane.xlu1 %2353 }
 0x491   :  { %v2366_v3 = vadd.f32 1e-08, %v2354_v50 }
 0x493   :  { %6968 = vrcp.f32 %v2366_v3 }
 0x498   :  { %v2357_v0 = vpop.xlane.xlu0 %2356 }
 0x499   :  { %v2367_v8 = vadd.f32 1e-08, %v2357_v0 }
 0x49b   :  { %6970 = vrcp.f32 %v2367_v8 }
 0x49c   :  { %v3199_v15 = vpop.permute.xlu0 %3198 }
 0x49d   :  { %v6969_v18 = vpop.eup %6968 }
 0x49e   :  { %v2382_v19 = vmul.f32 %v6969_v18, %v7587_v9 }
 0x4a0   :  { %v3357_v20 = vpop.permute.xlu0 %3356  ;;  %6674 = vmatmul.mubr.msk.f32.vlgmr.msra.gmra.mrb[44].mxu1 %vm416_vm2, %v2382_v19 }
 0x4a1   :  { %6682 = vmatpush3.msra.mxu1 %v2926_v39  ;;  %6683 = vmatprep.mubr.msk.f32.mxu1 %vm7087_vm1, %v7086_v26 }
 0x4a2   :  { %6691 = vmatprep.subr.mxu1 %v7086_v26 }
 0x4a4   :  { %v3355_v28 = vpop.permute.xlu0 %3354 }
 0x4a5   :  { %v6971_v53 = vpop.eup %6970 }
 0x4a6   :  { %v2383_v14 = vmul.f32 %v6971_v53, %v7591_v17 }
 0x4a8   :  { %6679 = vmatmul.mubr.msk.f32.vlgmr.msra.gmra.mrb[38].mxu0 %vm416_vm2, %v2383_v14  ;;  %v3513_v9 = vpop.permute.xlu0 %3512 }
 0x4a9   :  { %6687 = vmatpush3.xpose.msk.msra.mxu0 %vm416_vm2, %v7599_v22  ;;  %6688 = vmatprep.mubr.msk.f32.mxu0 %vm7087_vm1, %v7086_v26 }
 0x4aa   :  { %6696 = vmatprep.subr.mxu0 %v7086_v26 }
 0x4ac   :  { %6689 = vmatmul.mubr.msk.f32.vlgmr.msra.gmra.mrb[40].mxu0 %vm416_vm2, %v7601_v27  ;;  %v3511_v17 = vpop.permute.xlu0 %3510  ;;  %v3277_v27 = vpop.permute.xlu1 %3276 }
 0x4ad   :  { %6697 = vmatpush3.xpose.msk.msra.mxu0 %vm416_vm2, %v3201_v30  ;;  %6698 = vmatprep.mubr.msk.f32.mxu0 %vm7087_vm1, %v7086_v26 }
 0x4ae   :  { %6706 = vmatprep.subr.mxu0 %v7086_v26 }
 0x4b0   :  { %6699 = vmatmul.mubr.msk.f32.vlgmr.msra.gmra.mrb[42].mxu0 %vm416_vm2, %v3199_v15  ;;  %v3739_v22 = vpop.permute.xlu0 %3738 }
 0x4b1   :  { %6707 = vmatpush3.xpose.msk.msra.mxu0 %vm416_vm2, %v3357_v20  ;;  %6708 = vmatprep.mubr.msk.f32.mxu0 %vm7087_vm1, %v7086_v26 }
 0x4b2   :  { %6716 = vmatprep.subr.mxu0 %v7086_v26 }
 0x4b4   :  { %6709 = vmatmul.mubr.msk.f32.vlgmr.msra.gmra.mrb[44].mxu0 %vm416_vm2, %v3355_v28 }
 0x4b5   :  { %6717 = vmatpush3.xpose.msk.msra.mxu0 %vm416_vm2, %v3513_v9  ;;  %6718 = vmatprep.mubr.msk.f32.mxu0 %vm7087_vm1, %v7086_v26 }
 0x4b6   :  { %6726 = vmatprep.subr.mxu0 %v7086_v26 }
 0x4b8   :  { %6719 = vmatmul.mubr.msk.f32.vlgmr.msra.gmra.mrb[46].mxu0 %vm416_vm2, %v3511_v17 }
 0x4b9   :  { %6727 = vmatpush3.msra.mxu0 %v3739_v22  ;;  %6728 = vmatprep.mubr.msk.f32.mxu0 %vm7087_vm1, %v7086_v26 }
 0x4ba   :  { %6736 = vmatprep.subr.mxu0 %v7086_v26 }
 0x4c5   :  { %v2360_v24 = vpop.xlane.xlu1 %2359 }
 0x4c6   :  { %v2368_v25 = vadd.f32 1e-08, %v2360_v24 }
 0x4c8   :  { %6972 = vrcp.f32 %v2368_v25 }
 0x4c9   :  { %v3435_v31 = vpop.permute.xlu1 %3434 }
 0x4cd   :  { %v3433_v34 = vpop.permute.xlu1 %3432 }
 0x4d1   :  { %v3591_v38 = vpop.permute.xlu1 %3590 }
 0x4d2   :  { %v6973_v32 = vpop.eup %6972 }
 0x4d3   :  { %v2384_v35 = vmul.f32 %v6973_v32, %v7614_v36 }
 0x4d5   :  { %6684 = vmatmul.mubr.msk.f32.vlgmr.msra.gmra.mrb[46].mxu1 %vm416_vm2, %v2384_v35  ;;  %v3589_v36 = vpop.permute.xlu1 %3588 }
 0x4d6   :  { %6692 = vmatpush3.xpose.msk.msra.mxu1 %vm416_vm2, %v7643_v41  ;;  %6693 = vmatprep.mubr.msk.f32.mxu1 %vm7087_vm1, %v7086_v26 }
 0x4d7   :  { %6701 = vmatprep.subr.mxu1 %v7086_v26 }
 0x4d9   :  { %6694 = vmatmul.mubr.msk.f32.vlgmr.msra.gmra.mrb[48].mxu1 %vm416_vm2, %v7649_v42  ;;  %v3815_v21 = vpop.permute.xlu1 %3814 }
 0x4da   :  { %6702 = vmatpush3.xpose.msk.msra.mxu1 %vm416_vm2, %v3279_v40  ;;  %6703 = vmatprep.mubr.msk.f32.mxu1 %vm7087_vm1, %v7086_v26 }
 0x4db   :  { %6711 = vmatprep.subr.mxu1 %v7086_v26 }
 0x4dd   :  { %6704 = vmatmul.mubr.msk.f32.vlgmr.msra.gmra.mrb[50].mxu1 %vm416_vm2, %v3277_v27 }
 0x4de   :  { %6712 = vmatpush3.xpose.msk.msra.mxu1 %vm416_vm2, %v3435_v31  ;;  %6713 = vmatprep.mubr.msk.f32.mxu1 %vm7087_vm1, %v7086_v26 }
 0x4df   :  { %6721 = vmatprep.subr.mxu1 %v7086_v26 }
 0x4e1   :  { %6714 = vmatmul.mubr.msk.f32.vlgmr.msra.gmra.mrb[52].mxu1 %vm416_vm2, %v3433_v34 }
 0x4e2   :  { %6722 = vmatpush3.xpose.msk.msra.mxu1 %vm416_vm2, %v3591_v38  ;;  %6723 = vmatprep.mubr.msk.f32.mxu1 %vm7087_vm1, %v7086_v26 }
 0x4e3   :  { %6731 = vmatprep.subr.mxu1 %v7086_v26 }
 0x4e5   :  { %6724 = vmatmul.mubr.msk.f32.vlgmr.msra.gmra.mrb[54].mxu1 %vm416_vm2, %v3589_v36 }
 0x4e6   :  { %6732 = vmatpush3.msra.mxu1 %v3815_v21  ;;  %6733 = vmatprep.mubr.msk.f32.mxu1 %vm7087_vm1, %v7086_v26 }
 0x4e7   :  { %6741 = vmatprep.subr.mxu1 %v7086_v26 }
 0x506   :  { %v7742_v23 = vpop.f32.mrb[32].mxu0 }
 0x507   :  { %v6650_v10 = vpop.f32.mrb[33].mxu0 }
 0x50a   :  { %v7744_v29 = vpop.f32.mrb[34].mxu0 }
 0x50b   :  { %v6660_v16 = vpop.f32.mrb[35].mxu0 }
 0x53e   :  { %v7746_v39 = vpop.f32.mrb[40].mxu1 }
 0x53f   :  { %v6655_v41 = vpop.f32.mrb[41].mxu1 }
 0x542   :  { %v7748_v42 = vpop.f32.mrb[42].mxu1 }
 0x543   :  { %v6665_v33 = vpop.f32.mrb[43].mxu1 }
 0x546   :  { %v7750_v45 = vpop.f32.mrb[36].mxu0 }
 0x547   :  { %v6670_v44 = vpop.f32.mrb[37].mxu0 }
 0x573   :  { %v7752_v46 = vpop.f32.mrb[44].mxu1 }
 0x574   :  { %v6675_v47 = vpop.f32.mrb[45].mxu1 }
 0x57b   :  { %v7754_v37 = vpop.f32.mrb[38].mxu0 }
 0x57c   :  { %v6680_v43 = vpop.f32.mrb[39].mxu0 }
 0x57f   :  { %v3116_v62 = vpop.f32.mrb[40].mxu0 }
 0x580   :  { %v3666_v52 = vmul.f32 0.35355338, %v3116_v62  ;;  %v6690_v1 = vpop.f32.mrb[41].mxu0 }
 0x582   :  { %v3674_v2 = vmul.f32 1.442695, %v3666_v52 }
 0x583   :  { %v3272_v61 = vpop.f32.mrb[42].mxu0 }
 0x584   :  { %6974 = vpow2.f32 %v3674_v2  ;;  %v3668_v40 = vmul.f32 0.35355338, %v3272_v61  ;;  %v6700_v50 = vpop.f32.mrb[43].mxu0 }
 0x586   :  { %v3678_v3 = vmul.f32 1.442695, %v3668_v40 }
 0x587   :  { %v3428_v30 = vpop.f32.mrb[44].mxu0 }
 0x588   :  { %6976 = vpow2.f32 %v3678_v3  ;;  %v6710_v0 = vpop.f32.mrb[45].mxu0  ;;  %v3670_v27 = vmul.f32 0.35355338, %v3428_v30 }
 0x58a   :  { %v3682_v34 = vmul.f32 1.442695, %v3670_v27 }
 0x58b   :  { %v3584_v8 = vpop.f32.mrb[46].mxu0 }
 0x58c   :  { %v6720_v15 = vpop.f32.mrb[47].mxu0  ;;  %v3672_v35 = vmul.f32 0.35355338, %v3584_v8  ;;  %v3891_v8 = vpop.permute.xlu1 %3890 }
 0x58e   :  { %v7756_v18 = vpop.eup %6974  ;;  %v3686_v16 = vmul.f32 1.442695, %v3672_v35 }
 0x58f   :  { %v3690_v19 = vsel %vm416_vm2, %v7756_v18, 0.0 }
 0x590   :  { %3691 = vadd.xlane.f32.xlu0 %v3690_v19 }
 0x592   :  { %v7760_v20 = vpop.eup %6976 }
 0x593   :  { %v3696_v53 = vsel %vm416_vm2, %v7760_v20, 0.0 }
 0x594   :  { %3697 = vadd.xlane.f32.xlu0 %v3696_v53 }
 0x5a8   :  { %v7764_v28 = vpop.f32.mrb[46].mxu1 }
 0x5a9   :  { %v6685_v14 = vpop.f32.mrb[47].mxu1 }
 0x5ac   :  { %v3194_v9 = vpop.f32.mrb[48].mxu1 }
 0x5ad   :  { %v3667_v17 = vmul.f32 0.35355338, %v3194_v9  ;;  %v6695_v22 = vpop.f32.mrb[49].mxu1 }
 0x5af   :  { %v3676_v24 = vmul.f32 1.442695, %v3667_v17 }
 0x5b0   :  { %v3350_v25 = vpop.f32.mrb[50].mxu1 }
 0x5b1   :  { %6978 = vpow2.f32 %v3676_v24  ;;  %v3669_v31 = vmul.f32 0.35355338, %v3350_v25  ;;  %v6705_v32 = vpop.f32.mrb[51].mxu1 }
 0x5b3   :  { %v3680_v38 = vmul.f32 1.442695, %v3669_v31 }
 0x5b4   :  { %v3506_v36 = vpop.f32.mrb[52].mxu1 }
 0x5b5   :  { %6980 = vpow2.f32 %v3680_v38  ;;  %v3671_v21 = vmul.f32 0.35355338, %v3506_v36  ;;  %v6715_v10 = vpop.f32.mrb[53].mxu1 }
 0x5b6   :  { %6982 = vpow2.f32 %v3682_v34 }
 0x5b7   :  { %v3684_v41 = vmul.f32 1.442695, %v3671_v21 }
 0x5b8   :  { %v3662_v33 = vpop.f32.mrb[54].mxu1 }
 0x5b9   :  { %6984 = vpow2.f32 %v3684_v41  ;;  %v6725_v44 = vpop.f32.mrb[55].mxu1  ;;  %v3673_v30 = vmul.f32 0.35355338, %v3662_v33 }
 0x5ba   :  { %6986 = vpow2.f32 %v3686_v16 }
 0x5bb   :  { %v7766_v47 = vpop.eup %6978  ;;  %v3688_v0 = vmul.f32 1.442695, %v3673_v30 }
 0x5bc   :  { %v3693_v43 = vsel %vm416_vm2, %v7766_v47, 0.0 }
 0x5bd   :  { %3694 = vadd.xlane.f32.xlu1 %v3693_v43  ;;  %6988 = vpow2.f32 %v3688_v0 }
 0x5bf   :  { %v7770_v62 = vpop.eup %6980 }
 0x5c0   :  { %v3699_v52 = vsel %vm416_vm2, %v7770_v62, 0.0  ;;  %v7774_v1 = vpop.eup %6982 }
 0x5c1   :  { %3700 = vadd.xlane.f32.xlu0 %v3699_v52  ;;  %v3702_v61 = vsel %vm416_vm2, %v7774_v1, 0.0 }
 0x5c3   :  { %v7776_v2 = vpop.eup %6984 }
 0x5c4   :  { %v3705_v40 = vsel %vm416_vm2, %v7776_v2, 0.0  ;;  %v7782_v50 = vpop.eup %6986 }
 0x5c5   :  { %3703 = vadd.xlane.f32.xlu0 %v3702_v61  ;;  %3706 = vadd.xlane.f32.xlu1 %v3705_v40  ;;  %v3708_v3 = vsel %vm416_vm2, %v7782_v50, 0.0 }
 0x5c9   :  { %3709 = vadd.xlane.f32.xlu0 %v3708_v3 }
 0x5d6   :  { %4621 = vrot.lane.b32.xlu1 %v7313_v57, %s7090_s13  ;;  %v7800_v57 = vpop.eup %6988 }
 0x5df   :  { %4543 = vrot.lane.b32.xlu0 %v7282_v49, %s7090_s13  ;;  %v4043_v49 = vpop.permute.xlu0 %4042 }
 0x5e3   :  { %4701 = vrot.lane.b32.xlu0 %v7277_v48, %s7090_s13  ;;  %v3711_v48 = vsel %vm416_vm2, %v7800_v57, 0.0 }
 0x5e7   :  { %4699 = vrot.lane.b32.xlu0 %v7289_v51, %s7090_s13  ;;  %v7806_v51 = vpop.permute.xlu0 %4194 }
 0x5eb   :  { %4857 = vrot.lane.b32.xlu0 %v7296_v54, %s7090_s13  ;;  %v7810_v54 = vpop.permute.xlu0 %4389 }
 0x5ef   :  { %4855 = vrot.lane.b32.xlu0 %v7310_v56, %s7090_s13  ;;  %v7814_v56 = vpop.permute.xlu0 %4387 }
 0x5f3   :  { %5083 = vrot.lane.b32.xlu0 %v7358_v4, %s7090_s13  ;;  %v7820_v4 = vpop.permute.xlu0 %4545 }
 0x5f7   :  { %5387 = vrot.lane.b32.xlu0 %v7368_v11, %s7090_s13 }
 0x5fa   :  { %3712 = vadd.xlane.f32.xlu1 %v3711_v48 }
 0x60b   :  { %4779 = vrot.lane.b32.xlu1 %v7303_v55, %s7090_s13 }
 0x60f   :  { %4777 = vrot.lane.b32.xlu1 %v7332_v59, %s7090_s13 }
 0x613   :  { %4935 = vrot.lane.b32.xlu1 %v7325_v58, %s7090_s13  ;;  %v3967_v58 = vpop.permute.xlu1 %3966 }
 0x617   :  { %4933 = vrot.lane.b32.xlu1 %v7344_v60, %s7090_s13  ;;  %v4119_v53 = vpop.permute.xlu1 %4118 }
 0x61b   :  { %5159 = vrot.lane.b32.xlu1 %v7354_v63, %s7090_s13 }
 0x61d   :  { %v3692_v11 = vpop.xlane.xlu0 %3691 }
 0x61e   :  { %v3714_v55 = vadd.f32 1e-08, %v3692_v11 }
 0x61f   :  { %5235 = vrot.lane.b32.xlu1 %v7362_v6, %s7090_s13  ;;  %v4271_v6 = vpop.permute.xlu1 %4270 }
 0x620   :  { %6990 = vrcp.f32 %v3714_v55 }
 0x621   :  { %v3698_v59 = vpop.xlane.xlu0 %3697 }
 0x622   :  { %v3716_v15 = vadd.f32 1e-08, %v3698_v59 }
 0x623   :  { %5311 = vrot.lane.b32.xlu1 %v7360_v5, %s7090_s13 }
 0x624   :  { %6992 = vrcp.f32 %v3716_v15 }
 0x627   :  { %5463 = vrot.lane.b32.xlu1 %v7364_v7, %s7090_s13  ;;  %v7840_v7 = vpop.permute.xlu1 %4467 }
 0x62a   :  { %v6991_v60 = vpop.eup %6990 }
 0x62b   :  { %v3730_v63 = vmul.f32 %v6991_v60, %v7756_v18  ;;  %v7842_v18 = vpop.permute.xlu1 %4465 }
 0x62d   :  { %6729 = vmatmul.mubr.msk.f32.vlgmr.msra.gmra.mrb[48].mxu0 %vm416_vm2, %v3730_v63 }
 0x62e   :  { %v6993_v19 = vpop.eup %6992  ;;  %6737 = vmatpush3.msra.mxu0 %v3891_v8  ;;  %6738 = vmatprep.mubr.msk.f32.mxu0 %vm7087_vm1, %v7086_v26 }
 0x62f   :  { %6746 = vmatprep.subr.mxu0 %v7086_v26  ;;  %v3732_v5 = vmul.f32 %v6993_v19, %v7760_v20  ;;  %v7844_v14 = vpop.permute.xlu1 %4623 }
 0x631   :  { %6739 = vmatmul.mubr.msk.f32.vlgmr.msra.gmra.mrb[50].mxu0 %vm416_vm2, %v3732_v5 }
 0x632   :  { %6747 = vmatpush3.msra.mxu0 %v4043_v49  ;;  %6748 = vmatprep.mubr.msk.f32.mxu0 %vm7087_vm1, %v7086_v26 }
 0x633   :  { %6756 = vmatprep.subr.mxu0 %v7086_v26 }
 0x64a   :  { %v3695_v9 = vpop.xlane.xlu1 %3694 }
 0x64b   :  { %v3715_v17 = vadd.f32 1e-08, %v3695_v9 }
 0x64d   :  { %6994 = vrcp.f32 %v3715_v17 }
 0x64e   :  { %v3701_v22 = vpop.xlane.xlu0 %3700 }
 0x64f   :  { %v3717_v20 = vadd.f32 1e-08, %v3701_v22 }
 0x651   :  { %6996 = vrcp.f32 %v3717_v20 }
 0x652   :  { %v3704_v27 = vpop.xlane.xlu0 %3703  ;;  %v3707_v24 = vpop.xlane.xlu1 %3706 }
 0x653   :  { %v3718_v25 = vadd.f32 1e-08, %v3704_v27  ;;  %v3719_v31 = vadd.f32 1e-08, %v3707_v24 }
 0x655   :  { %6998 = vrcp.f32 %v3718_v25 }
 0x656   :  { %7000 = vrcp.f32 %v3719_v31  ;;  %v3710_v32 = vpop.xlane.xlu0 %3709  ;;  %v4622_v40 = vpop.permute.xlu1 %4621 }
 0x657   :  { %v6995_v34 = vpop.eup %6994  ;;  %v3720_v35 = vadd.f32 1e-08, %v3710_v32 }
 0x658   :  { %v3731_v38 = vmul.f32 %v6995_v34, %v7766_v47 }
 0x659   :  { %7002 = vrcp.f32 %v3720_v35 }
 0x65a   :  { %6734 = vmatmul.mubr.msk.f32.vlgmr.msra.gmra.mrb[56].mxu1 %vm416_vm2, %v3731_v38  ;;  %v4544_v21 = vpop.permute.xlu0 %4543 }
 0x65b   :  { %v6997_v36 = vpop.eup %6996  ;;  %6742 = vmatpush3.msra.mxu1 %v3967_v58  ;;  %6743 = vmatprep.mubr.msk.f32.mxu1 %vm7087_vm1, %v7086_v26 }
 0x65c   :  { %6751 = vmatprep.subr.mxu1 %v7086_v26  ;;  %v3733_v10 = vmul.f32 %v6997_v36, %v7770_v62 }
 0x65e   :  { %6744 = vmatmul.mubr.msk.f32.vlgmr.msra.gmra.mrb[58].mxu1 %vm416_vm2, %v3733_v10  ;;  %v4702_v44 = vpop.permute.xlu0 %4701 }
 0x65f   :  { %v6999_v16 = vpop.eup %6998  ;;  %6752 = vmatpush3.msra.mxu1 %v4119_v53  ;;  %6753 = vmatprep.mubr.msk.f32.mxu1 %vm7087_vm1, %v7086_v26 }
 0x660   :  { %v7001_v41 = vpop.eup %7000  ;;  %6761 = vmatprep.subr.mxu1 %v7086_v26  ;;  %v3734_v33 = vmul.f32 %v6999_v16, %v7774_v1 }
 0x661   :  { %v3735_v47 = vmul.f32 %v7001_v41, %v7776_v2 }
 0x662   :  { %6749 = vmatmul.mubr.msk.f32.vlgmr.msra.gmra.mrb[52].mxu0 %vm416_vm2, %v3734_v33  ;;  %v4700_v52 = vpop.permute.xlu0 %4699 }
 0x663   :  { %v7003_v43 = vpop.eup %7002  ;;  %6757 = vmatpush3.msra.mxu0 %v7806_v51  ;;  %6754 = vmatmul.mubr.msk.f32.vlgmr.msra.gmra.mrb[60].mxu1 %vm416_vm2, %v3735_v47 }
 0x664   :  { %6762 = vmatpush3.msra.mxu1 %v4271_v6  ;;  %6758 = vmatprep.mubr.msk.f32.mxu0 %vm7087_vm1, %v7086_v26  ;;  %v3736_v62 = vmul.f32 %v7003_v43, %v7782_v50 }
 0x665   :  { %6766 = vmatprep.subr.mxu0 %v7086_v26  ;;  %6763 = vmatprep.mubr.msk.f32.mxu1 %vm7087_vm1, %v7086_v26 }
 0x666   :  { %6759 = vmatmul.mubr.msk.f32.vlgmr.msra.gmra.mrb[54].mxu0 %vm416_vm2, %v3736_v62  ;;  %6771 = vmatprep.subr.mxu1 %v7086_v26  ;;  %v4858_v1 = vpop.permute.xlu0 %4857 }
 0x667   :  { %6768 = vmatprep.mubr.msk.f32.mxu0 %vm7087_vm1, %v7086_v26 }
 0x66a   :  { %6767 = vmatpush3.xpose.msk.msra.mxu0 %vm416_vm2, %v7810_v54  ;;  %v4856_v2 = vpop.permute.xlu0 %4855 }
 0x66b   :  { %6776 = vmatprep.subr.mxu0 %v7086_v26 }
 0x66d   :  { %6769 = vmatmul.mubr.msk.f32.vlgmr.msra.gmra.mrb[56].mxu0 %vm416_vm2, %v7814_v56 }
 0x66e   :  { %6777 = vmatpush3.xpose.msk.msra.mxu0 %vm416_vm2, %v7820_v4  ;;  %6778 = vmatprep.mubr.msk.f32.mxu0 %vm7087_vm1, %v7086_v26  ;;  %v5084_v61 = vpop.permute.xlu0 %5083 }
 0x66f   :  { %6786 = vmatprep.subr.mxu0 %v7086_v26 }
 0x671   :  { %6779 = vmatmul.mubr.msk.f32.vlgmr.msra.gmra.mrb[58].mxu0 %vm416_vm2, %v4544_v21 }
 0x672   :  { %6787 = vmatpush3.xpose.msk.msra.mxu0 %vm416_vm2, %v4702_v44  ;;  %6788 = vmatprep.mubr.msk.f32.mxu0 %vm7087_vm1, %v7086_v26 }
 0x673   :  { %6796 = vmatprep.subr.mxu0 %v7086_v26 }
 0x675   :  { %6789 = vmatmul.mubr.msk.f32.vlgmr.msra.gmra.mrb[60].mxu0 %vm416_vm2, %v4700_v52 }
 0x676   :  { %6797 = vmatpush3.xpose.msk.msra.mxu0 %vm416_vm2, %v4858_v1  ;;  %6798 = vmatprep.mubr.msk.f32.mxu0 %vm7087_vm1, %v7086_v26 }
 0x677   :  { %6806 = vmatprep.subr.mxu0 %v7086_v26 }
 0x679   :  { %6799 = vmatmul.mubr.msk.f32.vlgmr.msra.gmra.mrb[62].mxu0 %vm416_vm2, %v4856_v2 }
 0x67a   :  { %6807 = vmatpush3.msra.mxu0 %v5084_v61  ;;  %6808 = vmatprep.mubr.msk.f32.mxu0 %vm7087_vm1, %v7086_v26 }
 0x67b   :  { %6816 = vmatprep.subr.mxu0 %v7086_v26 }
 0x687   :  { %v3713_v50 = vpop.xlane.xlu1 %3712 }
 0x688   :  { %v3721_v3 = vadd.f32 1e-08, %v3713_v50 }
 0x68a   :  { %7004 = vrcp.f32 %v3721_v3 }
 0x68b   :  { %v4780_v30 = vpop.permute.xlu1 %4779 }
 0x68f   :  { %v4778_v48 = vpop.permute.xlu1 %4777 }
 0x693   :  { %v4936_v51 = vpop.permute.xlu1 %4935 }
 0x694   :  { %v7005_v0 = vpop.eup %7004 }
 0x695   :  { %v3737_v49 = vmul.f32 %v7005_v0, %v7800_v57 }
 0x697   :  { %6764 = vmatmul.mubr.msk.f32.vlgmr.msra.gmra.mrb[62].mxu1 %vm416_vm2, %v3737_v49  ;;  %v4934_v57 = vpop.permute.xlu1 %4933 }
 0x698   :  { %6772 = vmatpush3.xpose.msk.msra.mxu1 %vm416_vm2, %v7840_v7  ;;  %6773 = vmatprep.mubr.msk.f32.mxu1 %vm7087_vm1, %v7086_v26 }
 0x699   :  { %6781 = vmatprep.subr.mxu1 %v7086_v26 }
 0x69b   :  { %6774 = vmatmul.mubr.msk.f32.vlgmr.msra.gmra.mrb[64].mxu1 %vm416_vm2, %v7842_v18  ;;  %v5160_v54 = vpop.permute.xlu1 %5159 }
 0x69c   :  { %6782 = vmatpush3.xpose.msk.msra.mxu1 %vm416_vm2, %v7844_v14  ;;  %6783 = vmatprep.mubr.msk.f32.mxu1 %vm7087_vm1, %v7086_v26 }
 0x69d   :  { %6791 = vmatprep.subr.mxu1 %v7086_v26 }
 0x69f   :  { %6784 = vmatmul.mubr.msk.f32.vlgmr.msra.gmra.mrb[66].mxu1 %vm416_vm2, %v4622_v40 }
 0x6a0   :  { %6792 = vmatpush3.xpose.msk.msra.mxu1 %vm416_vm2, %v4780_v30  ;;  %6793 = vmatprep.mubr.msk.f32.mxu1 %vm7087_vm1, %v7086_v26 }
 0x6a1   :  { %6801 = vmatprep.subr.mxu1 %v7086_v26 }
 0x6a3   :  { %6794 = vmatmul.mubr.msk.f32.vlgmr.msra.gmra.mrb[68].mxu1 %vm416_vm2, %v4778_v48 }
 0x6a4   :  { %6802 = vmatpush3.xpose.msk.msra.mxu1 %vm416_vm2, %v4936_v51  ;;  %6803 = vmatprep.mubr.msk.f32.mxu1 %vm7087_vm1, %v7086_v26 }
 0x6a5   :  { %6811 = vmatprep.subr.mxu1 %v7086_v26 }
 0x6a7   :  { %6804 = vmatmul.mubr.msk.f32.vlgmr.msra.gmra.mrb[70].mxu1 %vm416_vm2, %v4934_v57 }
 0x6a8   :  { %6812 = vmatpush3.msra.mxu1 %v5160_v54  ;;  %6813 = vmatprep.mubr.msk.f32.mxu1 %vm7087_vm1, %v7086_v26 }
 0x6a9   :  { %6821 = vmatprep.subr.mxu1 %v7086_v26 }
 0x700   :  { %v7923_v56 = vpop.f32.mrb[48].mxu0 }
 0x701   :  { %v6730_v4 = vpop.f32.mrb[49].mxu0 }
 0x704   :  { %v7925_v11 = vpop.f32.mrb[50].mxu0 }
 0x705   :  { %v6740_v55 = vpop.f32.mrb[51].mxu0 }
 0x72d   :  { %v7927_v59 = vpop.f32.mrb[56].mxu1 }
 0x72e   :  { %v6735_v8 = vpop.f32.mrb[57].mxu1 }
 0x731   :  { %v7929_v15 = vpop.f32.mrb[58].mxu1 }
 0x732   :  { %v6745_v58 = vpop.f32.mrb[59].mxu1 }
 0x735   :  { %v7931_v60 = vpop.f32.mrb[52].mxu0 }
 0x736   :  { %v7933_v63 = vpop.f32.mrb[60].mxu1  ;;  %v6750_v19 = vpop.f32.mrb[53].mxu0 }
 0x737   :  { %v6755_v53 = vpop.f32.mrb[61].mxu1 }
 0x739   :  { %v7935_v5 = vpop.f32.mrb[54].mxu0 }
 0x73a   :  { %v6760_v6 = vpop.f32.mrb[55].mxu0 }
 0x740   :  { %v4461_v7 = vpop.f32.mrb[56].mxu0 }
 0x741   :  { %v5011_v18 = vmul.f32 0.35355338, %v4461_v7  ;;  %v6770_v14 = vpop.f32.mrb[57].mxu0 }
 0x743   :  { %v5019_v9 = vmul.f32 1.442695, %v5011_v18 }
 0x744   :  { %v4617_v17 = vpop.f32.mrb[58].mxu0 }
 0x745   :  { %7006 = vpow2.f32 %v5019_v9  ;;  %v5013_v22 = vmul.f32 0.35355338, %v4617_v17  ;;  %v6780_v20 = vpop.f32.mrb[59].mxu0 }
 0x747   :  { %v5023_v27 = vmul.f32 1.442695, %v5013_v22 }
 0x748   :  { %v4773_v24 = vpop.f32.mrb[60].mxu0 }
 0x749   :  { %7008 = vpow2.f32 %v5023_v27  ;;  %v6790_v25 = vpop.f32.mrb[61].mxu0  ;;  %v5015_v44 = vmul.f32 0.35355338, %v4773_v24 }
 0x74b   :  { %v5027_v1 = vmul.f32 1.442695, %v5015_v44 }
 0x74c   :  { %v4929_v31 = vpop.f32.mrb[62].mxu0 }
 0x74d   :  { %v6800_v32 = vpop.f32.mrb[63].mxu0  ;;  %v5017_v2 = vmul.f32 0.35355338, %v4929_v31 }
 0x74f   :  { %v7937_v34 = vpop.eup %7006  ;;  %v5031_v30 = vmul.f32 1.442695, %v5017_v2 }
 0x750   :  { %v5035_v35 = vsel %vm416_vm2, %v7937_v34, 0.0 }
 0x751   :  { %5036 = vadd.xlane.f32.xlu0 %v5035_v35 }
 0x753   :  { %v7941_v38 = vpop.eup %7008 }
 0x754   :  { %v5041_v36 = vsel %vm416_vm2, %v7941_v38, 0.0 }
 0x755   :  { %5042 = vadd.xlane.f32.xlu0 %v5041_v36 }
 0x76a   :  { %v4342_v21 = vpop.f32.mrb[62].mxu1 }
 0x76b   :  { %v6765_v10 = vpop.f32.mrb[63].mxu1 }
 0x76e   :  { %v4539_v16 = vpop.f32.mrb[64].mxu1 }
 0x76f   :  { %v5012_v41 = vmul.f32 0.35355338, %v4539_v16  ;;  %v6775_v33 = vpop.f32.mrb[65].mxu1 }
 0x771   :  { %v5021_v47 = vmul.f32 1.442695, %v5012_v41 }
 0x772   :  { %v4695_v43 = vpop.f32.mrb[66].mxu1 }
 0x773   :  { %7010 = vpow2.f32 %v5021_v47  ;;  %v5014_v62 = vmul.f32 0.35355338, %v4695_v43  ;;  %v6785_v52 = vpop.f32.mrb[67].mxu1 }
 0x775   :  { %v5025_v61 = vmul.f32 1.442695, %v5014_v62 }
 0x776   :  { %v4851_v40 = vpop.f32.mrb[68].mxu1 }
 0x777   :  { %7012 = vpow2.f32 %v5025_v61  ;;  %v5016_v50 = vmul.f32 0.35355338, %v4851_v40  ;;  %v6795_v3 = vpop.f32.mrb[69].mxu1 }
 0x778   :  { %7014 = vpow2.f32 %v5027_v1 }
 0x779   :  { %v5029_v0 = vmul.f32 1.442695, %v5016_v50 }
 0x77a   :  { %v5007_v48 = vpop.f32.mrb[70].mxu1 }
 0x77b   :  { %7016 = vpow2.f32 %v5029_v0  ;;  %v5018_v49 = vmul.f32 0.35355338, %v5007_v48  ;;  %v6805_v51 = vpop.f32.mrb[71].mxu1 }
 0x77c   :  { %7018 = vpow2.f32 %v5031_v30 }
 0x77d   :  { %v7945_v57 = vpop.eup %7010  ;;  %v5033_v54 = vmul.f32 1.442695, %v5018_v49 }
 0x77e   :  { %v5038_v4 = vsel %vm416_vm2, %v7945_v57, 0.0 }
 0x77f   :  { %7020 = vpow2.f32 %v5033_v54  ;;  %5039 = vadd.xlane.f32.xlu1 %v5038_v4 }
 0x781   :  { %v7949_v55 = vpop.eup %7012 }
 0x782   :  { %v5044_v8 = vsel %vm416_vm2, %v7949_v55, 0.0  ;;  %v7953_v58 = vpop.eup %7014 }
 0x783   :  { %5045 = vadd.xlane.f32.xlu0 %v5044_v8  ;;  %v5047_v53 = vsel %vm416_vm2, %v7953_v58, 0.0 }
 0x785   :  { %v7955_v19 = vpop.eup %7016 }
 0x786   :  { %v5050_v6 = vsel %vm416_vm2, %v7955_v19, 0.0  ;;  %v7961_v7 = vpop.eup %7018 }
 0x787   :  { %5048 = vadd.xlane.f32.xlu0 %v5047_v53  ;;  %5051 = vadd.xlane.f32.xlu1 %v5050_v6  ;;  %v5053_v14 = vsel %vm416_vm2, %v7961_v7, 0.0  ;;  %v5740_v53 = vld [vmem:[%s8177_s7] sm:$0xff]  ;;  %v5741_v6 = vld [vmem:[%s8177_s7 + $0x8] sm:$0xff] }
 0x789   :  { %v7963_v18 = vpop.eup %7020 }
 0x78a   :  { %v5056_v9 = vsel %vm416_vm2, %v7963_v18, 0.0 }
 0x78b   :  { %5054 = vadd.xlane.f32.xlu0 %v5053_v14  ;;  %5057 = vadd.xlane.f32.xlu1 %v5056_v9  ;;  %v5743_v14 = vld [vmem:[%s8177_s7 + $0x18] sm:$0xff] }
 0x79c   :  { %5615 = vrot.lane.b32.xlu1 %v7370_v12, %s7090_s13  ;;  %v5388_v12 = vpop.permute.xlu0 %5387 }
 0x7a0   :  { %3011 = vrot.lane.b32.xlu1 %v7746_v39, %s7091_s14 }
 0x7a1   :  { %5539 = vrot.lane.b32.xlu0 %v7372_v13, %s7090_s13 }
 0x7a4   :  { %4356 = vrot.lane.b32.xlu1 %v7927_v59, %s7092_s15 }
 0x7a5   :  { %3009 = vrot.lane.b32.xlu0 %v7742_v23, %s7091_s14 }
 0x7a8   :  { %3015 = vrot.lane.b32.xlu1 %v7748_v42, %s7091_s14 }
 0x7a9   :  { %4354 = vrot.lane.b32.xlu0 %v7923_v56, %s7092_s15 }
 0x7ac   :  { %4360 = vrot.lane.b32.xlu1 %v7929_v15, %s7092_s15 }
 0x7ad   :  { %3013 = vrot.lane.b32.xlu0 %v7744_v29, %s7091_s14 }
 0x7b0   :  { %3019 = vrot.lane.b32.xlu1 %v7752_v46, %s7091_s14 }
 0x7b1   :  { %4358 = vrot.lane.b32.xlu0 %v7925_v11, %s7092_s15 }
 0x7b4   :  { %4364 = vrot.lane.b32.xlu1 %v7933_v63, %s7092_s15 }
 0x7b5   :  { %3017 = vrot.lane.b32.xlu0 %v7750_v45, %s7091_s14  ;;  %v5236_v45 = vpop.permute.xlu1 %5235 }
 0x7b8   :  { %3023 = vrot.lane.b32.xlu1 %v7764_v28, %s7091_s14 }
 0x7b9   :  { %4362 = vrot.lane.b32.xlu0 %v7931_v60, %s7092_s15  ;;  %v5312_v56 = vpop.permute.xlu1 %5311 }
 0x7bc   :  { %4368 = vrot.lane.b32.xlu1 %v4342_v21, %s7092_s15 }
 0x7bd   :  { %3021 = vrot.lane.b32.xlu0 %v7754_v37, %s7091_s14  ;;  %v5464_v11 = vpop.permute.xlu1 %5463 }
 0x7c1   :  { %4366 = vrot.lane.b32.xlu0 %v7935_v5, %s7092_s15 }
 0x7de   :  { %v5037_v13 = vpop.xlane.xlu0 %5036 }
 0x7df   :  { %v5059_v23 = vadd.f32 1e-08, %v5037_v13 }
 0x7e1   :  { %7022 = vrcp.f32 %v5059_v23 }
 0x7e2   :  { %v5043_v29 = vpop.xlane.xlu0 %5042 }
 0x7e3   :  { %v5061_v39 = vadd.f32 1e-08, %v5043_v29 }
 0x7e5   :  { %7024 = vrcp.f32 %v5061_v39 }
 0x7eb   :  { %v7023_v42 = vpop.eup %7022 }
 0x7ec   :  { %v5075_v46 = vmul.f32 %v7023_v42, %v7937_v34 }
 0x7ee   :  { %6809 = vmatmul.mubr.msk.f32.vlgmr.msra.gmra.mrb[64].mxu0 %vm416_vm2, %v5075_v46 }
 0x7ef   :  { %v7025_v28 = vpop.eup %7024  ;;  %6817 = vmatpush3.msra.mxu0 %v5236_v45  ;;  %6818 = vmatprep.mubr.msk.f32.mxu0 %vm7087_vm1, %v7086_v26 }
 0x7f0   :  { %6826 = vmatprep.subr.mxu0 %v7086_v26  ;;  %v5077_v37 = vmul.f32 %v7025_v28, %v7941_v38 }
 0x7f2   :  { %6819 = vmatmul.mubr.msk.f32.vlgmr.msra.gmra.mrb[66].mxu0 %vm416_vm2, %v5077_v37 }
 0x7f3   :  { %6827 = vmatpush3.msra.mxu0 %v5388_v12  ;;  %6828 = vmatprep.mubr.msk.f32.mxu0 %vm7087_vm1, %v7086_v26 }
 0x7f4   :  { %6836 = vmatprep.subr.mxu0 %v7086_v26 }
 0x80c   :  { %v5040_v59 = vpop.xlane.xlu1 %5039 }
 0x80d   :  { %v5060_v15 = vadd.f32 1e-08, %v5040_v59 }
 0x80f   :  { %7026 = vrcp.f32 %v5060_v15 }
 0x810   :  { %v5046_v60 = vpop.xlane.xlu0 %5045 }
 0x811   :  { %v5062_v63 = vadd.f32 1e-08, %v5046_v60 }
 0x813   :  { %7028 = vrcp.f32 %v5062_v63 }
 0x814   :  { %v5049_v5 = vpop.xlane.xlu0 %5048  ;;  %v5052_v17 = vpop.xlane.xlu1 %5051 }
 0x815   :  { %v5063_v22 = vadd.f32 1e-08, %v5049_v5  ;;  %v5064_v20 = vadd.f32 1e-08, %v5052_v17 }
 0x817   :  { %7030 = vrcp.f32 %v5063_v22 }
 0x818   :  { %7032 = vrcp.f32 %v5064_v20  ;;  %v5055_v27 = vpop.xlane.xlu0 %5054  ;;  %v5058_v24 = vpop.xlane.xlu1 %5057 }
 0x819   :  { %v7027_v25 = vpop.eup %7026  ;;  %v5065_v31 = vadd.f32 1e-08, %v5055_v27  ;;  %v5066_v32 = vadd.f32 1e-08, %v5058_v24 }
 0x81a   :  { %v5076_v34 = vmul.f32 %v7027_v25, %v7945_v57 }
 0x81b   :  { %7034 = vrcp.f32 %v5065_v31 }
 0x81c   :  { %7036 = vrcp.f32 %v5066_v32  ;;  %6814 = vmatmul.mubr.msk.f32.vlgmr.msra.gmra.mrb[72].mxu1 %vm416_vm2, %v5076_v34  ;;  %v5540_v35 = vpop.permute.xlu0 %5539  ;;  %v5616_v38 = vpop.permute.xlu1 %5615 }
 0x81d   :  { %v7029_v36 = vpop.eup %7028  ;;  %6822 = vmatpush3.msra.mxu1 %v5312_v56  ;;  %6823 = vmatprep.mubr.msk.f32.mxu1 %vm7087_vm1, %v7086_v26 }
 0x81e   :  { %6831 = vmatprep.subr.mxu1 %v7086_v26  ;;  %v5078_v21 = vmul.f32 %v7029_v36, %v7949_v55  ;;  %v6280_v36 = vld [vmem:[%s8178_s8] ss:$0 sm:$0xff] }
 0x820   :  { %6824 = vmatmul.mubr.msk.f32.vlgmr.msra.gmra.mrb[74].mxu1 %vm416_vm2, %v5078_v21  ;;  %v3010_v10 = vpop.permute.xlu0 %3009  ;;  %v3012_v16 = vpop.permute.xlu1 %3011 }
 0x821   :  { %v7031_v41 = vpop.eup %7030  ;;  %6832 = vmatpush3.msra.mxu1 %v5464_v11  ;;  %3034 = vst.msk [vmem:[#allocation2] sm:$0xff] %vm3033_vm3, %v3010_v10  ;;  %3035 = vst.msk [vmem:[#allocation2 + $0x8] sm:$0xff] %vm3033_vm3, %v3012_v16  ;;  %6833 = vmatprep.mubr.msk.f32.mxu1 %vm7087_vm1, %v7086_v26 }
 0x822   :  { %v7033_v33 = vpop.eup %7032  ;;  %6841 = vmatprep.subr.mxu1 %v7086_v26  ;;  %v5079_v44 = vmul.f32 %v7031_v41, %v7953_v58 }
 0x823   :  { %v5080_v47 = vmul.f32 %v7033_v33, %v7955_v19 }
 0x824   :  { %6829 = vmatmul.mubr.msk.f32.vlgmr.msra.gmra.mrb[68].mxu0 %vm416_vm2, %v5079_v44  ;;  %v4355_v43 = vpop.permute.xlu0 %4354  ;;  %v4357_v62 = vpop.permute.xlu1 %4356 }
 0x825   :  { %v7035_v52 = vpop.eup %7034  ;;  %6837 = vmatpush3.msra.mxu0 %v5540_v35  ;;  %4379 = vst.msk [vmem:[#allocation2] sm:$0xff] %vm4378_vm4, %v4355_v43  ;;  %6834 = vmatmul.mubr.msk.f32.vlgmr.msra.gmra.mrb[76].mxu1 %vm416_vm2, %v5080_v47  ;;  %4380 = vst.msk [vmem:[#allocation2 + $0x8] sm:$0xff] %vm4378_vm4, %v4357_v62 }
 0x826   :  { %v7037_v1 = vpop.eup %7036  ;;  %6842 = vmatpush3.msra.mxu1 %v5616_v38  ;;  %6838 = vmatprep.mubr.msk.f32.mxu0 %vm7087_vm1, %v7086_v26  ;;  %v5081_v2 = vmul.f32 %v7035_v52, %v7961_v7  ;;  %v6890_v7 = vpack.c.bf16 %v5741_v6, %v5740_v53 }
 0x827   :  { %6843 = vmatprep.mubr.msk.f32.mxu1 %vm7087_vm1, %v7086_v26  ;;  %v5082_v61 = vmul.f32 %v7037_v1, %v7963_v18  ;;  %v5742_v18 = vld [vmem:[%s8177_s7 + $0x10] sm:$0xff] }
 0x828   :  { %6839 = vmatmul.mubr.msk.f32.vlgmr.msra.gmra.mrb[70].mxu0 %vm416_vm2, %v5081_v2  ;;  %v3014_v40 = vpop.permute.xlu0 %3013  ;;  %v3016_v50 = vpop.permute.xlu1 %3015  ;;  %6891 = vmatprep.subr.bf16.mxu0 %v6890_v7  ;;  %v6894_v9 = vpack.c.bf16 %v5743_v14, %v5742_v18 }
 0x829   :  { %3036 = vst.msk [vmem:[#allocation2 + $0x10] sm:$0xff] %vm3033_vm3, %v3014_v40  ;;  %6844 = vmatmul.mubr.msk.f32.vlgmr.msra.gmra.mrb[78].mxu1 %vm416_vm2, %v5082_v61  ;;  %3037 = vst.msk [vmem:[#allocation2 + $0x18] sm:$0xff] %vm3033_vm3, %v3016_v50  ;;  %6893 = vmatpush3.bf16.msra.mxu0 %v6890_v7  ;;  %v6289_v61 = vld [vmem:[%s8179_s9] ss:$0 sm:$0xff] }
 0x82a   :  { %6895 = vmatprep.subr.bf16.mxu0 %v6894_v9 }
 0x82c   :  { %v4359_v3 = vpop.permute.xlu0 %4358  ;;  %v4361_v30 = vpop.permute.xlu1 %4360 }
 0x82d   :  { %4381 = vst.msk [vmem:[#allocation2 + $0x10] sm:$0xff] %vm4378_vm4, %v4359_v3  ;;  %4382 = vst.msk [vmem:[#allocation2 + $0x18] sm:$0xff] %vm4378_vm4, %v4361_v30  ;;  %6897 = vmatpush3.bf16.msra.mxu0 %v6894_v9 }
 0x830   :  { %v3018_v0 = vpop.permute.xlu0 %3017  ;;  %v3020_v26 = vpop.permute.xlu1 %3019 }
 0x831   :  { %3038 = vst.msk [vmem:[#allocation2 + $0x20] sm:$0xff] %vm3033_vm3, %v3018_v0  ;;  %3039 = vst.msk [vmem:[#allocation2 + $0x28] sm:$0xff] %vm3033_vm3, %v3020_v26 }
 0x834   :  { %v4363_v48 = vpop.permute.xlu0 %4362  ;;  %v4365_v49 = vpop.permute.xlu1 %4364 }
 0x835   :  { %4383 = vst.msk [vmem:[#allocation2 + $0x20] sm:$0xff] %vm4378_vm4, %v4363_v48  ;;  %4384 = vst.msk [vmem:[#allocation2 + $0x28] sm:$0xff] %vm4378_vm4, %v4365_v49 }
 0x838   :  { %v3022_v51 = vpop.permute.xlu0 %3021  ;;  %v3024_v57 = vpop.permute.xlu1 %3023 }
 0x839   :  { %3040 = vst.msk [vmem:[#allocation2 + $0x30] sm:$0xff] %vm3033_vm3, %v3022_v51  ;;  %3041 = vst.msk [vmem:[#allocation2 + $0x38] sm:$0xff] %vm3033_vm3, %v3024_v57 }
 0x83c   :  { %v4367_v54 = vpop.permute.xlu0 %4366  ;;  %v4369_v4 = vpop.permute.xlu1 %4368 }
 0x83d   :  { %4385 = vst.msk [vmem:[#allocation2 + $0x30] sm:$0xff] %vm4378_vm4, %v4367_v54  ;;  %4386 = vst.msk [vmem:[#allocation2 + $0x38] sm:$0xff] %vm4378_vm4, %v4369_v4 }
 0x8c1   :  { %v5155_v55 = vpop.f32.mrb[64].mxu0 }
 0x8c2   :  { %v6810_v8 = vpop.f32.mrb[65].mxu0  ;;  %5699 = vrot.lane.b32.xlu0 %v5155_v55, %s7093_s16 }
 0x8c5   :  { %v5307_v58 = vpop.f32.mrb[66].mxu0 }
 0x8c6   :  { %v6820_v19 = vpop.f32.mrb[67].mxu0  ;;  %5703 = vrot.lane.b32.xlu0 %v5307_v58, %s7093_s16 }
 0x8ef   :  { %v5231_v12 = vpop.f32.mrb[72].mxu1 }
 0x8f0   :  { %5701 = vrot.lane.b32.xlu1 %v5231_v12, %s7093_s16  ;;  %v6815_v13 = vpop.f32.mrb[73].mxu1 }
 0x8f3   :  { %v5383_v23 = vpop.f32.mrb[74].mxu1 }
 0x8f4   :  { %5705 = vrot.lane.b32.xlu1 %v5383_v23, %s7093_s16  ;;  %v6825_v29 = vpop.f32.mrb[75].mxu1 }
 0x8f7   :  { %v5459_v39 = vpop.f32.mrb[68].mxu0 }
 0x8f8   :  { %v5535_v42 = vpop.f32.mrb[76].mxu1  ;;  %5707 = vrot.lane.b32.xlu0 %v5459_v39, %s7093_s16  ;;  %v6830_v46 = vpop.f32.mrb[69].mxu0 }
 0x8f9   :  { %5709 = vrot.lane.b32.xlu1 %v5535_v42, %s7093_s16  ;;  %v6835_v45 = vpop.f32.mrb[77].mxu1 }
 0x8fb   :  { %v5611_v28 = vpop.f32.mrb[70].mxu0 }
 0x8fc   :  { %v5687_v37 = vpop.f32.mrb[78].mxu1  ;;  %5711 = vrot.lane.b32.xlu0 %v5611_v28, %s7093_s16  ;;  %v6840_v56 = vpop.f32.mrb[71].mxu0 }
 0x8fd   :  { %5713 = vrot.lane.b32.xlu1 %v5687_v37, %s7093_s16  ;;  %v6845_v11 = vpop.f32.mrb[79].mxu1 }
 0x934   :  { %v5700_v59 = vpop.permute.xlu0 %5699 }
 0x935   :  { %5724 = vst.msk [vmem:[#allocation2] sm:$0xff] %vm5723_vm5, %v5700_v59 }
 0x938   :  { %v5704_v15 = vpop.permute.xlu0 %5703 }
 0x939   :  { %5726 = vst.msk [vmem:[#allocation2 + $0x10] sm:$0xff] %vm5723_vm5, %v5704_v15 }
 0x93c   :  { %v8058_v60 = vld [vmem:[#allocation2] sm:$0xff] }
 0x93d   :  { %6854 = vmatprep.mubr.msk.f32.mxu0 %vm54_vm0, %v8058_v60 }
 0x940   :  { %v8069_v27 = vld [vmem:[#allocation2 + $0x10] sm:$0xff] }
 0x962   :  { %v5702_v63 = vpop.permute.xlu1 %5701 }
 0x963   :  { %5725 = vst.msk [vmem:[#allocation2 + $0x8] sm:$0xff] %vm5723_vm5, %v5702_v63 }
 0x966   :  { %v5706_v5 = vpop.permute.xlu1 %5705 }
 0x967   :  { %5727 = vst.msk [vmem:[#allocation2 + $0x18] sm:$0xff] %vm5723_vm5, %v5706_v5 }
 0x96a   :  { %v5708_v17 = vpop.permute.xlu0 %5707  ;;  %v8064_v22 = vld [vmem:[#allocation2 + $0x8] sm:$0xff] }
 0x96b   :  { %5728 = vst.msk [vmem:[#allocation2 + $0x20] sm:$0xff] %vm5723_vm5, %v5708_v17  ;;  %v5710_v20 = vpop.permute.xlu1 %5709  ;;  %6855 = vmatmul.mubr.msk.f32.vlgmr.msra.gmra.mrb[72].mxu0 %vm54_vm0, %v8064_v22 }
 0x96c   :  { %5729 = vst.msk [vmem:[#allocation2 + $0x28] sm:$0xff] %vm5723_vm5, %v5710_v20  ;;  %6857 = vmatprep.mubr.msk.f32.mxu0 %vm54_vm0, %v8069_v27 }
 0x96e   :  { %v5712_v24 = vpop.permute.xlu0 %5711  ;;  %v8074_v25 = vld [vmem:[#allocation2 + $0x18] sm:$0xff] }
 0x96f   :  { %5730 = vst.msk [vmem:[#allocation2 + $0x30] sm:$0xff] %vm5723_vm5, %v5712_v24  ;;  %v5714_v31 = vpop.permute.xlu1 %5713  ;;  %6858 = vmatmul.mubr.msk.f32.gmra.mrb[74].mxu0 %vm54_vm0, %v8074_v25 }
 0x970   :  { %5731 = vst.msk [vmem:[#allocation2 + $0x38] sm:$0xff] %vm5723_vm5, %v5714_v31 }
 0x972   :  { %v8080_v32 = vld [vmem:[#allocation2 + $0x20] sm:$0xff] }
 0x973   :  { %6860 = vmatprep.mubr.msk.f32.mxu0 %vm54_vm0, %v8080_v32  ;;  %v8084_v34 = vld [vmem:[#allocation2 + $0x28] sm:$0xff] }
 0x974   :  { %6861 = vmatmul.mubr.msk.f32.gmra.mrb[76].mxu0 %vm54_vm0, %v8084_v34 }
 0x976   :  { %v8088_v35 = vld [vmem:[#allocation2 + $0x30] sm:$0xff] }
 0x977   :  { %6863 = vmatprep.mubr.msk.f32.mxu0 %vm54_vm0, %v8088_v35  ;;  %v8092_v38 = vld [vmem:[#allocation2 + $0x38] sm:$0xff] }
 0x978   :  { %6864 = vmatmul.mubr.msk.f32.gmra.mrb[78].mxu0 %vm54_vm0, %v8092_v38 }
 0xa3e   :  { %v6856_v21 = vpop.f32.mrb[72].mxu0 }
 0xa3f   :  { %v5847_v10 = vadd.f32 %v6856_v21, %v6280_v36  ;;  %v5841_v16 = vpop.f32.mrb[73].mxu0 }
 0xa40   :  { %v5842_v41 = vadd.f32 %v6280_v36, %v5841_v16 }
 0xa41   :  { %7038 = vtanh.f32 %v5847_v10 }
 0xa42   :  { %7040 = vtanh.f32 %v5842_v41  ;;  %v6859_v33 = vpop.f32.mrb[74].mxu0 }
 0xa43   :  { %v5857_v44 = vadd.f32 %v6859_v33, %v6280_v36  ;;  %v5851_v47 = vpop.f32.mrb[75].mxu0 }
 0xa44   :  { %v5852_v43 = vadd.f32 %v6280_v36, %v5851_v47 }
 0xa45   :  { %7042 = vtanh.f32 %v5857_v44 }
 0xa46   :  { %7044 = vtanh.f32 %v5852_v43 }
 0xa47   :  { %v6862_v62 = vpop.f32.mrb[76].mxu0 }
 0xa48   :  { %v5867_v52 = vadd.f32 %v6862_v62, %v6280_v36  ;;  %v5861_v1 = vpop.f32.mrb[77].mxu0 }
 0xa49   :  { %v5862_v2 = vadd.f32 %v6280_v36, %v5861_v1 }
 0xa4a   :  { %7046 = vtanh.f32 %v5867_v52 }
 0xa4b   :  { %v7039_v40 = vpop.eup %7038  ;;  %7048 = vtanh.f32 %v5862_v2  ;;  %v6865_v50 = vpop.f32.mrb[78].mxu0 }
 0xa4c   :  { %v7041_v3 = vpop.eup %7040  ;;  %v5877_v30 = vadd.f32 %v6865_v50, %v6280_v36  ;;  %v5871_v0 = vpop.f32.mrb[79].mxu0  ;;  %v5896_v26 = vmul.f32 %v7039_v40, %v6289_v61 }
 0xa4d   :  { %v5872_v48 = vadd.f32 %v6280_v36, %v5871_v0  ;;  %v5895_v49 = vmul.f32 %v7041_v3, %v6289_v61 }
 0xa4e   :  { %7050 = vtanh.f32 %v5877_v30  ;;  %v5907_v51 = vsel %vm5903_vm6, %v5896_v26, 0.0 }
 0xa4f   :  { %v7043_v57 = vpop.eup %7042  ;;  %7052 = vtanh.f32 %v5872_v48  ;;  %5908 = vadd.xlane.f32.xlu1 %v5907_v51  ;;  %v5904_v54 = vsel %vm5903_vm6, %v5895_v49, 0.0 }
 0xa50   :  { %v7045_v4 = vpop.eup %7044  ;;  %5905 = vadd.xlane.f32.xlu0 %v5904_v54  ;;  %v5898_v55 = vmul.f32 %v7043_v57, %v6289_v61 }
 0xa51   :  { %v5897_v58 = vmul.f32 %v7045_v4, %v6289_v61 }
 0xa52   :  { %v5913_v8 = vsel %vm5903_vm6, %v5898_v55, 0.0 }
 0xa53   :  { %v5910_v7 = vsel %vm5903_vm6, %v5897_v58, 0.0 }
 0xa54   :  { %v7047_v19 = vpop.eup %7046  ;;  %5914 = vadd.xlane.f32.xlu0 %v5913_v8 }
 0xa55   :  { %v7049_v53 = vpop.eup %7048  ;;  %v5900_v6 = vmul.f32 %v7047_v19, %v6289_v61 }
 0xa56   :  { %v5899_v14 = vmul.f32 %v7049_v53, %v6289_v61 }
 0xa57   :  { %v5919_v18 = vsel %vm5903_vm6, %v5900_v6, 0.0 }
 0xa58   :  { %v7051_v9 = vpop.eup %7050  ;;  %5911 = vadd.xlane.f32.xlu0 %v5910_v7  ;;  %5920 = vadd.xlane.f32.xlu1 %v5919_v18  ;;  %v5916_v23 = vsel %vm5903_vm6, %v5899_v14, 0.0 }
 0xa59   :  { %v7053_v12 = vpop.eup %7052  ;;  %v5902_v13 = vmul.f32 %v7051_v9, %v6289_v61 }
 0xa5a   :  { %v5901_v39 = vmul.f32 %v7053_v12, %v6289_v61 }
 0xa5b   :  { %v5925_v29 = vsel %vm5903_vm6, %v5902_v13, 0.0 }
 0xa5c   :  { %5917 = vadd.xlane.f32.xlu0 %v5916_v23  ;;  %5926 = vadd.xlane.f32.xlu1 %v5925_v29  ;;  %v5922_v42 = vsel %vm5903_vm6, %v5901_v39, 0.0 }
 0xa60   :  { %5923 = vadd.xlane.f32.xlu0 %v5922_v42 }
 0xadc   :  { %v5909_v46 = vpop.xlane.xlu1 %5908 }
 0xadd   :  { %v5934_v45 = vrot.slane %v5909_v46, 4  ;;  %v5906_v28 = vpop.xlane.xlu0 %5905 }
 0xade   :  { %v5928_v37 = vrot.slane %v5906_v28, 4 }
 0xadf   :  { %v5935_v56 = vmax.f32 %v5909_v46, %v5934_v45 }
 0xae0   :  { %v5929_v11 = vmax.f32 %v5906_v28, %v5928_v37 }
 0xae1   :  { %v5936_v59 = vrot.slane %v5935_v56, 2  ;;  %v5915_v15 = vpop.xlane.xlu0 %5914 }
 0xae2   :  { %v5930_v63 = vrot.slane %v5929_v11, 2  ;;  %v5946_v5 = vrot.slane %v5915_v15, 4 }
 0xae3   :  { %v5937_v17 = vmax.f32 %v5935_v56, %v5936_v59 }
 0xae4   :  { %v5931_v20 = vmax.f32 %v5929_v11, %v5930_v63  ;;  %v5947_v24 = vmax.f32 %v5915_v15, %v5946_v5 }
 0xae5   :  { %v5938_v31 = vrot.slane %v5937_v17, 1  ;;  %v5912_v36 = vpop.xlane.xlu0 %5911  ;;  %v5921_v21 = vpop.xlane.xlu1 %5920 }
 0xae6   :  { %v5932_v10 = vrot.slane %v5931_v20, 1  ;;  %v5948_v16 = vrot.slane %v5947_v24, 2  ;;  %v5940_v41 = vrot.slane %v5912_v36, 4  ;;  %v5958_v33 = vrot.slane %v5921_v21, 4 }
 0xae7   :  { %v5939_v44 = vmax.f32 %v5937_v17, %v5938_v31 }
 0xae8   :  { %v5933_v47 = vmax.f32 %v5931_v20, %v5932_v10  ;;  %v5949_v43 = vmax.f32 %v5947_v24, %v5948_v16  ;;  %v5941_v62 = vmax.f32 %v5912_v36, %v5940_v41  ;;  %v5959_v52 = vmax.f32 %v5921_v21, %v5958_v33 }
 0xae9   :  { %v5977_v1 = vsub.f32 %v5909_v46, %v5939_v44  ;;  %v5918_v2 = vpop.xlane.xlu0 %5917  ;;  %v5927_v61 = vpop.xlane.xlu1 %5926 }
 0xaea   :  { %v5976_v40 = vsub.f32 %v5906_v28, %v5933_v47  ;;  %v5950_v50 = vrot.slane %v5949_v43, 1  ;;  %v5942_v3 = vrot.slane %v5941_v62, 2  ;;  %v5960_v30 = vrot.slane %v5959_v52, 2 }
 0xaeb   :  { %v5986_v0 = vmul.f32 1.442695, %v5977_v1  ;;  %v5952_v26 = vrot.slane %v5918_v2, 4  ;;  %v5970_v48 = vrot.slane %v5927_v61, 4 }
 0xaec   :  { %v5984_v49 = vmul.f32 1.442695, %v5976_v40  ;;  %v5951_v51 = vmax.f32 %v5949_v43, %v5950_v50  ;;  %v5943_v57 = vmax.f32 %v5941_v62, %v5942_v3  ;;  %v5961_v54 = vmax.f32 %v5959_v52, %v5960_v30 }
 0xaed   :  { %7054 = vpow2.f32 %v5986_v0  ;;  %v5953_v4 = vmax.f32 %v5918_v2, %v5952_v26  ;;  %v5971_v55 = vmax.f32 %v5927_v61, %v5970_v48  ;;  %v5924_v8 = vpop.xlane.xlu0 %5923 }
 0xaee   :  { %7056 = vpow2.f32 %v5984_v49  ;;  %v5979_v58 = vsub.f32 %v5915_v15, %v5951_v51  ;;  %v5944_v19 = vrot.slane %v5943_v57, 1  ;;  %v5962_v53 = vrot.slane %v5961_v54, 1 }
 0xaef   :  { %v5954_v6 = vrot.slane %v5953_v4, 2  ;;  %v5972_v7 = vrot.slane %v5971_v55, 2  ;;  %v5964_v18 = vrot.slane %v5924_v8, 4 }
 0xaf0   :  { %v5990_v14 = vmul.f32 1.442695, %v5979_v58  ;;  %v5945_v9 = vmax.f32 %v5943_v57, %v5944_v19  ;;  %v5963_v12 = vmax.f32 %v5961_v54, %v5962_v53 }
 0xaf1   :  { %v5955_v13 = vmax.f32 %v5953_v4, %v5954_v6  ;;  %v5973_v23 = vmax.f32 %v5971_v55, %v5972_v7  ;;  %v5965_v29 = vmax.f32 %v5924_v8, %v5964_v18 }
 0xaf2   :  { %7058 = vpow2.f32 %v5990_v14  ;;  %v5978_v39 = vsub.f32 %v5912_v36, %v5945_v9  ;;  %v5981_v42 = vsub.f32 %v5921_v21, %v5963_v12 }
 0xaf3   :  { %v5956_v46 = vrot.slane %v5955_v13, 1  ;;  %v5974_v45 = vrot.slane %v5973_v23, 1  ;;  %v5966_v28 = vrot.slane %v5965_v29, 2 }
 0xaf4   :  { %v5988_v37 = vmul.f32 1.442695, %v5978_v39  ;;  %v5994_v56 = vmul.f32 1.442695, %v5981_v42 }
 0xaf5   :  { %v5957_v11 = vmax.f32 %v5955_v13, %v5956_v46  ;;  %v5975_v59 = vmax.f32 %v5973_v23, %v5974_v45  ;;  %v5967_v15 = vmax.f32 %v5965_v29, %v5966_v28 }
 0xaf6   :  { %7060 = vpow2.f32 %v5988_v37 }
 0xaf7   :  { %v8110_v63 = vpop.eup %7054  ;;  %7062 = vpow2.f32 %v5994_v56  ;;  %v5980_v5 = vsub.f32 %v5918_v2, %v5957_v11  ;;  %v5983_v17 = vsub.f32 %v5927_v61, %v5975_v59  ;;  %v5968_v20 = vrot.slane %v5967_v15, 1 }
 0xaf8   :  { %v8112_v24 = vpop.eup %7056  ;;  %v6006_v31 = vrot.slane %v8110_v63, 4 }
 0xaf9   :  { %v6000_v36 = vrot.slane %v8112_v24, 4  ;;  %v5992_v21 = vmul.f32 1.442695, %v5980_v5  ;;  %v5998_v10 = vmul.f32 1.442695, %v5983_v17  ;;  %v5969_v16 = vmax.f32 %v5967_v15, %v5968_v20 }
 0xafa   :  { %v6007_v41 = vadd.f32 %v8110_v63, %v6006_v31 }
 0xafb   :  { %v6001_v33 = vadd.f32 %v8112_v24, %v6000_v36  ;;  %7064 = vpow2.f32 %v5992_v21  ;;  %v5982_v44 = vsub.f32 %v5924_v8, %v5969_v16 }
 0xafc   :  { %v8118_v47 = vpop.eup %7058  ;;  %v6008_v43 = vrot.slane %v6007_v41, 2  ;;  %7066 = vpow2.f32 %v5998_v10 }
 0xafd   :  { %v6002_v62 = vrot.slane %v6001_v33, 2  ;;  %v6018_v52 = vrot.slane %v8118_v47, 4  ;;  %v5996_v1 = vmul.f32 1.442695, %v5982_v44 }
 0xafe   :  { %v6009_v2 = vadd.f32 %v6008_v43, %v6007_v41 }
 0xaff   :  { %v6003_v61 = vadd.f32 %v6002_v62, %v6001_v33  ;;  %v6019_v40 = vadd.f32 %v8118_v47, %v6018_v52  ;;  %7068 = vpow2.f32 %v5996_v1 }
 0xb00   :  { %v8122_v50 = vpop.eup %7060  ;;  %v6010_v3 = vrot.slane %v6009_v2, 1 }
 0xb01   :  { %v8124_v30 = vpop.eup %7062  ;;  %v6004_v0 = vrot.slane %v6003_v61, 1  ;;  %v6020_v26 = vrot.slane %v6019_v40, 2  ;;  %v6012_v48 = vrot.slane %v8122_v50, 4 }
 0xb02   :  { %v6011_v49 = vadd.f32 %v6010_v3, %v6009_v2  ;;  %v6030_v51 = vrot.slane %v8124_v30, 4 }
 0xb03   :  { %v6005_v57 = vadd.f32 %v6004_v0, %v6003_v61  ;;  %v6021_v54 = vadd.f32 %v6020_v26, %v6019_v40  ;;  %v6013_v4 = vadd.f32 %v8122_v50, %v6012_v48 }
 0xb04   :  { %7070 = vrcp.f32 %v6011_v49  ;;  %v6031_v55 = vadd.f32 %v8124_v30, %v6030_v51 }
 0xb05   :  { %v8130_v8 = vpop.eup %7064  ;;  %7072 = vrcp.f32 %v6005_v57  ;;  %v6022_v58 = vrot.slane %v6021_v54, 1  ;;  %v6014_v19 = vrot.slane %v6013_v4, 2 }
 0xb06   :  { %v8132_v53 = vpop.eup %7066  ;;  %v6032_v6 = vrot.slane %v6031_v55, 2  ;;  %v6024_v7 = vrot.slane %v8130_v8, 4 }
 0xb07   :  { %v6023_v18 = vadd.f32 %v6022_v58, %v6021_v54  ;;  %v6015_v14 = vadd.f32 %v6014_v19, %v6013_v4  ;;  %v6042_v9 = vrot.slane %v8132_v53, 4 }
 0xb08   :  { %v6033_v12 = vadd.f32 %v6032_v6, %v6031_v55  ;;  %v6025_v13 = vadd.f32 %v8130_v8, %v6024_v7 }
 0xb09   :  { %v8137_v23 = vpop.eup %7068  ;;  %7074 = vrcp.f32 %v6023_v18  ;;  %v6016_v29 = vrot.slane %v6015_v14, 1  ;;  %v6043_v39 = vadd.f32 %v8132_v53, %v6042_v9 }
 0xb0a   :  { %v6034_v42 = vrot.slane %v6033_v12, 1  ;;  %v6026_v46 = vrot.slane %v6025_v13, 2  ;;  %v6036_v45 = vrot.slane %v8137_v23, 4 }
 0xb0b   :  { %v6017_v28 = vadd.f32 %v6016_v29, %v6015_v14  ;;  %v6044_v37 = vrot.slane %v6043_v39, 2 }
 0xb0c   :  { %v6035_v56 = vadd.f32 %v6034_v42, %v6033_v12  ;;  %v6027_v11 = vadd.f32 %v6026_v46, %v6025_v13  ;;  %v6037_v59 = vadd.f32 %v8137_v23, %v6036_v45 }
 0xb0d   :  { %7076 = vrcp.f32 %v6017_v28  ;;  %v6045_v15 = vadd.f32 %v6044_v37, %v6043_v39 }
 0xb0e   :  { %v7071_v5 = vpop.eup %7070  ;;  %7078 = vrcp.f32 %v6035_v56  ;;  %v6028_v17 = vrot.slane %v6027_v11, 1  ;;  %v6038_v20 = vrot.slane %v6037_v59, 2 }
 0xb0f   :  { %v7073_v31 = vpop.eup %7072  ;;  %v6057_v36 = vmul.f32 %v7071_v5, %v8110_v63  ;;  %v6046_v21 = vrot.slane %v6045_v15, 1 }
 0xb10   :  { %v6056_v10 = vmul.f32 %v7073_v31, %v8112_v24  ;;  %v6029_v16 = vadd.f32 %v6028_v17, %v6027_v11  ;;  %v6039_v41 = vadd.f32 %v6038_v20, %v6037_v59 }
 0xb11   :  { %v6065_v33 = vmul.f32 %v6057_v36, %v8064_v22  ;;  %v6047_v44 = vadd.f32 %v6046_v21, %v6045_v15 }
 0xb12   :  { %v6064_v43 = vmul.f32 %v6056_v10, %v8058_v60  ;;  %7080 = vrcp.f32 %v6029_v16  ;;  %v6040_v62 = vrot.slane %v6039_v41, 1 }
 0xb13   :  { %v7075_v52 = vpop.eup %7074  ;;  %v6079_v1 = vsel %vm54_vm0, %v6065_v33, 0.0  ;;  %7082 = vrcp.f32 %v6047_v44 }
 0xb14   :  { %v6080_v2 = vrot.slane %v6079_v1, 4  ;;  %v6072_v61 = vsel %vm54_vm0, %v6064_v43, 0.0  ;;  %v6059_v63 = vmul.f32 %v7075_v52, %v8118_v47  ;;  %v6041_v40 = vadd.f32 %v6040_v62, %v6039_v41 }
 0xb15   :  { %v6073_v24 = vrot.slane %v6072_v61, 4 }
 0xb16   :  { %v6081_v3 = vadd.f32 %v6080_v2, %v6079_v1  ;;  %v6067_v0 = vmul.f32 %v6059_v63, %v8074_v25  ;;  %7084 = vrcp.f32 %v6041_v40 }
 0xb17   :  { %v7077_v22 = vpop.eup %7076  ;;  %v6074_v26 = vadd.f32 %v6073_v24, %v6072_v61 }
 0xb18   :  { %v7079_v60 = vpop.eup %7078  ;;  %v6093_v48 = vsel %vm54_vm0, %v6067_v0, 0.0  ;;  %v6058_v49 = vmul.f32 %v7077_v22, %v8122_v50  ;;  %v6082_v51 = vrot.slane %v6081_v3, 2 }
 0xb19   :  { %v6094_v57 = vrot.slane %v6093_v48, 4  ;;  %v6061_v54 = vmul.f32 %v7079_v60, %v8124_v30  ;;  %v6075_v4 = vrot.slane %v6074_v26, 2 }
 0xb1a   :  { %v6066_v47 = vmul.f32 %v6058_v49, %v8069_v27  ;;  %v6083_v7 = vadd.f32 %v6082_v51, %v6081_v3 }
 0xb1b   :  { %v6069_v55 = vmul.f32 %v6061_v54, %v8084_v34  ;;  %v6095_v19 = vadd.f32 %v6094_v57, %v6093_v48  ;;  %v6076_v9 = vadd.f32 %v6075_v4, %v6074_v26 }
 0xb1c   :  { %v7081_v58 = vpop.eup %7080  ;;  %v6086_v25 = vsel %vm54_vm0, %v6066_v47, 0.0  ;;  %v6084_v28 = vrot.slane %v6083_v7, 1 }
 0xb1d   :  { %v7083_v6 = vpop.eup %7082  ;;  %v6087_v18 = vrot.slane %v6086_v25, 4  ;;  %v6107_v14 = vsel %vm54_vm0, %v6069_v55, 0.0  ;;  %v6060_v12 = vmul.f32 %v7081_v58, %v8130_v8  ;;  %v6096_v27 = vrot.slane %v6095_v19, 2 }
 0xb1e   :  { %v6108_v50 = vrot.slane %v6107_v14, 4  ;;  %v6063_v30 = vmul.f32 %v7083_v6, %v8132_v53  ;;  %v6077_v37 = vrot.slane %v6076_v9, 1 }
 0xb1f   :  { %v6088_v13 = vadd.f32 %v6087_v18, %v6086_v25  ;;  %v6068_v34 = vmul.f32 %v6060_v12, %v8080_v32  ;;  %v6097_v15 = vadd.f32 %v6096_v27, %v6095_v19 }
 0xb20   :  { %v7085_v29 = vpop.eup %7084  ;;  %v6109_v39 = vadd.f32 %v6108_v50, %v6107_v14  ;;  %v6071_v42 = vmul.f32 %v6063_v30, %v8092_v38  ;;  %v6085_v38 = vadd.f32 %v6084_v28, %v6083_v7  ;;  %v6078_v36 = vadd.f32 %v6077_v37, %v6076_v9 }
 0xb21   :  { %v6089_v46 = vrot.slane %v6088_v13, 2  ;;  %v6062_v45 = vmul.f32 %v7085_v29, %v8137_v23  ;;  %v6100_v56 = vsel %vm54_vm0, %v6068_v34, 0.0  ;;  %v6098_v33 = vrot.slane %v6097_v15, 1 }
 0xb22   :  { %v6121_v11 = vsel %vm54_vm0, %v6071_v42, 0.0  ;;  %v6101_v59 = vrot.slane %v6100_v56, 4  ;;  %v6110_v5 = vrot.slane %v6109_v39, 2  ;;  %v6137_v52 = vsel %vm6136_vm7, %v6085_v38, %v6078_v36 }
 0xb23   :  { %v6090_v8 = vadd.f32 %v6089_v46, %v6088_v13  ;;  %v6122_v53 = vrot.slane %v6121_v11, 4  ;;  %v6070_v17 = vmul.f32 %v6062_v45, %v8088_v35  ;;  %v6099_v63 = vadd.f32 %v6098_v33, %v6097_v15 }
 0xb24   :  { %v6102_v32 = vadd.f32 %v6101_v59, %v6100_v56  ;;  %v6111_v44 = vadd.f32 %v6110_v5, %v6109_v39 }
 0xb25   :  { %v6091_v20 = vrot.slane %v6090_v8, 1  ;;  %v6123_v31 = vadd.f32 %v6122_v53, %v6121_v11  ;;  %v6114_v23 = vsel %vm54_vm0, %v6070_v17, 0.0 }
 0xb26   :  { %v6103_v10 = vrot.slane %v6102_v32, 2  ;;  %v6115_v41 = vrot.slane %v6114_v23, 4  ;;  %v6112_v40 = vrot.slane %v6111_v44, 1 }
 0xb27   :  { %v6092_v21 = vadd.f32 %v6091_v20, %v6090_v8  ;;  %v6124_v16 = vrot.slane %v6123_v31, 2 }
 0xb28   :  { %v6104_v43 = vadd.f32 %v6103_v10, %v6102_v32  ;;  %v6116_v62 = vadd.f32 %v6115_v41, %v6114_v23  ;;  %v6113_v48 = vadd.f32 %v6112_v40, %v6111_v44 }
 0xb29   :  { %v6125_v1 = vadd.f32 %v6124_v16, %v6123_v31  ;;  %v6139_v35 = vsel %vm6138_vm8, %v6092_v21, %v6137_v52 }
 0xb2a   :  { %v6105_v2 = vrot.slane %v6104_v43, 1  ;;  %v6117_v61 = vrot.slane %v6116_v62, 2  ;;  %v6141_v0 = vsel %vm6140_vm9, %v6099_v63, %v6139_v35 }
 0xb2b   :  { %v6126_v22 = vrot.slane %v6125_v1, 1 }
 0xb2c   :  { %v6106_v24 = vadd.f32 %v6105_v2, %v6104_v43  ;;  %v6118_v3 = vadd.f32 %v6117_v61, %v6116_v62 }
 0xb2d   :  { %v6127_v51 = vadd.f32 %v6126_v22, %v6125_v1 }
 0xb2e   :  { %v6143_v26 = vsel %vm6142_vm10, %v6106_v24, %v6141_v0  ;;  %v6119_v60 = vrot.slane %v6118_v3, 1 }
 0xb2f   :  { %v6145_v57 = vsel %vm6144_vm11, %v6113_v48, %v6143_v26 }
 0xb30   :  { %v6120_v49 = vadd.f32 %v6119_v60, %v6118_v3 }
 0xb32   :  { %v6147_v54 = vsel %vm6146_vm12, %v6120_v49, %v6145_v57 }
 0xb33   :  { %v6149_v4 = vsel %vm6148_vm13, %v6127_v51, %v6147_v54 }
 0xb34   :  { %v6151_v47 = vsel %vm54_vm0, %v6149_v4, 0.0 }
 0xb35   :  { %6152 = vst [vmem:[%s8180_s10] sm:$0xff] %v6151_v47 }

</bundles_post_ra>
